<compile_context>
chip_gen: v7x
topology: tpu7x:2x2x1
jax: 0.10.0
libtpu: 0.0.40
codegen_flags: <defaults>
</compile_context>

<pallas_src>
import numpy as np
import jax
import jax.numpy as jnp
from jax.experimental import pallas as pl
from jax.experimental.pallas import tpu as pltpu

LANE = 128


def _round_up(x, m):
    return ((x + m - 1) // m) * m


# ----------------------------------------------------------------------------
# Pallas kernels
# ----------------------------------------------------------------------------

def _head_body(x_f32, m_ref, w1_ref, b1_ref, wh_ref, bh_ref, out_ref, slab_ref,
               H, W, Cp):
    """Fused RPN head body for one image's (HW, Cp) f32 feature tile.

    The 3x3 'same' conv is ONE MXU matmul with K = 9*Cp: the 9 spatially
    shifted (pltpu.roll) + border-masked copies of the feature tile are packed
    along the lane axis into a bf16 im2col slab in VMEM scratch, then
    contracted against the (9*Cp, Hd) weight slab.  ReLU and the fused
    [conf | reg | zero-pad] 1x1-conv head follow as a second matmul whose
    lane-dense (HW, Npad) result is stored as one unmasked block.
    """
    HW = H * W
    t = 0
    for dy in (-1, 0, 1):
        for dx in (-1, 0, 1):
            shift = (-(dy * W + dx)) % HW
            xs = x_f32 if shift == 0 else pltpu.roll(x_f32, shift=shift, axis=0)
            # mask kills taps that wrapped across the 'same'-padding border;
            # kept in f32 (v5e has no bf16 VALU); single bf16 cast at the store.
            slab_ref[:, t * Cp:(t + 1) * Cp] = (xs * m_ref[t]).astype(jnp.bfloat16)
            t += 1
    # TODO(synk): Dropout(p=0.3) is identity in eval mode; training-mode dropout omitted.
    h = jnp.maximum(
        jnp.dot(slab_ref[...], w1_ref[...], preferred_element_type=jnp.float32)
        + b1_ref[...], 0.0)
    out_ref[0] = (jnp.dot(h.astype(jnp.bfloat16), wh_ref[...],
                          preferred_element_type=jnp.float32) + bh_ref[...])


def fused_rpn_forward(patches, w_bb, b_bb, masks, w1_slab, b1, wh, bh, H, W):
    """ONE fused pallas_call per image: backbone patch-conv matmul -> in-VMEM
    3x3 conv (single K=9*Cpad matmul) -> ReLU -> fused conf|reg head.

    patches: (B, HW, Kr) bf16   w_bb: (Kr, Cpad) bf16   b_bb: (1, Cpad) f32
    masks:   (9, HW, 1)  f32    w1_slab: (9*Cpad, Hd) bf16   b1: (1, Hd) f32
    wh:      (Hd, Npad)  bf16   bh: (1, Npad) f32
    returns  feat (B, HW, Cpad) bf16,  head (B, HW, Npad) f32
    """
    B, HW, Kr = patches.shape
    Cp = w_bb.shape[1]
    Hd = w1_slab.shape[1]
    Np = wh.shape[1]

    def kernel(p_ref, wbb_ref, bbb_ref, m_ref, w1_ref, b1_ref, wh_ref, bh_ref,
               feat_ref, out_ref, slab_ref):
        feat = (jnp.dot(p_ref[0], wbb_ref[...], preferred_element_type=jnp.float32)
                + bbb_ref[...])                            # (HW, Cp) f32
        feat_ref[0] = feat.astype(jnp.bfloat16)            # bf16 feature-map output
        _head_body(feat, m_ref, w1_ref, b1_ref, wh_ref, bh_ref, out_ref,
                   slab_ref, H, W, Cp)

    # TODO(synk): for very large feature maps (v7x: 64 MiB VMEM) add a haloed
    # HW-tile grid axis; at the sizes this path is selected for, the whole-map
    # block fits comfortably (see RegionProposalNetworkPallas.use_fused).
    return pl.pallas_call(
        kernel,
        out_shape=(jax.ShapeDtypeStruct((B, HW, Cp), jnp.bfloat16),
                   jax.ShapeDtypeStruct((B, HW, Np), jnp.float32)),
        grid=(B,),
        in_specs=[
            pl.BlockSpec((1, HW, Kr), lambda b: (b, 0, 0)),
            pl.BlockSpec((Kr, Cp), lambda b: (0, 0)),
            pl.BlockSpec((1, Cp), lambda b: (0, 0)),
            pl.BlockSpec((9, HW, 1), lambda b: (0, 0, 0)),
            pl.BlockSpec((9 * Cp, Hd), lambda b: (0, 0)),
            pl.BlockSpec((1, Hd), lambda b: (0, 0)),
            pl.BlockSpec((Hd, Np), lambda b: (0, 0)),
            pl.BlockSpec((1, Np), lambda b: (0, 0)),
        ],
        out_specs=(pl.BlockSpec((1, HW, Cp), lambda b: (b, 0, 0)),
                   pl.BlockSpec((1, HW, Np), lambda b: (b, 0, 0))),
        scratch_shapes=[pltpu.VMEM((HW, 9 * Cp), jnp.bfloat16)],
        compiler_params=pltpu.CompilerParams(
            dimension_semantics=("parallel",),
            vmem_limit_bytes=32 * 1024 * 1024),
    )(patches, w_bb, b_bb, masks, w1_slab, b1, wh, bh)


def _backbone_kernel(p_ref, w_ref, b_ref, o_ref):
    # patchified strided-conv stem as one bf16 MXU matmul, f32 accumulate,
    # bf16 store (halves HBM writeback of the feature map).
    o_ref[...] = (
        jnp.dot(p_ref[...], w_ref[...], preferred_element_type=jnp.float32)
        + b_ref[...]
    ).astype(o_ref.dtype)


def backbone_forward(patches_bf16, w_bf16, b_f32, tile_m=1024):
    """patches: (M, K) bf16; w: (K, Cpad) bf16; b: (1, Cpad) f32 -> (M, Cpad) bf16.

    Tile picked to (a) divide M so no host-side pad / ragged tail is needed,
    (b) be a multiple of 16 (bf16 sublane packing), (c) give >=2 grid blocks
    when M allows so both v7x TensorCores are used.
    """
    M, K = patches_bf16.shape
    Cp = w_bf16.shape[1]
    SUB = 16
    cap = min(tile_m, max(SUB, _round_up(-(-M // 2), SUB)))
    tm = 0
    t = max(SUB, (min(cap, M) // SUB) * SUB)
    while t >= SUB:
        if M % t == 0:
            tm = t
            break
        t -= SUB
    if tm == 0:
        # rare ragged case: pad rows up to a multiple of 16 and recurse.
        Mp = _round_up(M, SUB)
        out = backbone_forward(jnp.pad(patches_bf16, ((0, Mp - M), (0, 0))),
                               w_bf16, b_f32, tile_m)
        return out[:M]
    return pl.pallas_call(
        _backbone_kernel,
        out_shape=jax.ShapeDtypeStruct((M, Cp), jnp.bfloat16),
        grid=(M // tm,),
        in_specs=[
            pl.BlockSpec((tm, K), lambda i: (i, 0)),
            pl.BlockSpec((K, Cp), lambda i: (0, 0)),
            pl.BlockSpec((1, Cp), lambda i: (0, 0)),
        ],
        out_specs=pl.BlockSpec((tm, Cp), lambda i: (i, 0)),
        compiler_params=pltpu.CompilerParams(
            dimension_semantics=("parallel",)),
    )(patches_bf16, w_bf16, b_f32)


def rpn_head_forward(feat_bf16, masks, w1_slab, b1, wh, bh, H, W):
    """Two-kernel fallback head: reads the bf16 feature map from HBM, casts to
    f32 ONCE, then runs the same single-matmul (K=9*Cpad) fused head body."""
    B, HW, Cp = feat_bf16.shape
    Hd = w1_slab.shape[1]
    Np = wh.shape[1]

    def kernel(feat_ref, m_ref, w1_ref, b1_ref, wh_ref, bh_ref, out_ref, slab_ref):
        x = feat_ref[0].astype(jnp.float32)                 # single cast
        _head_body(x, m_ref, w1_ref, b1_ref, wh_ref, bh_ref, out_ref,
                   slab_ref, H, W, Cp)

    # TODO(synk): for very large maps on v7x (64 MiB VMEM), add a haloed HW-tile
    # grid axis (roll wraps inside a tile, so the halo must land first).
    return pl.pallas_call(
        kernel,
        out_shape=jax.ShapeDtypeStruct((B, HW, Np), jnp.float32),
        grid=(B,),
        in_specs=[
            pl.BlockSpec((1, HW, Cp), lambda b: (b, 0, 0)),
            pl.BlockSpec((9, HW, 1), lambda b: (0, 0, 0)),
            pl.BlockSpec((9 * Cp, Hd), lambda b: (0, 0)),
            pl.BlockSpec((1, Hd), lambda b: (0, 0)),
            pl.BlockSpec((Hd, Np), lambda b: (0, 0)),
            pl.BlockSpec((1, Np), lambda b: (0, 0)),
        ],
        out_specs=pl.BlockSpec((1, HW, Np), lambda b: (b, 0, 0)),
        scratch_shapes=[pltpu.VMEM((HW, 9 * Cp), jnp.bfloat16)],
        compiler_params=pltpu.CompilerParams(
            dimension_semantics=("parallel",),
            vmem_limit_bytes=32 * 1024 * 1024),
    )(feat_bf16, masks, w1_slab, b1, wh, bh)


def _fused_vmem_bytes(HW, Kr, Cp, Hd, Np):
    """Rough per-core VMEM footprint estimate of the fused per-image kernel."""
    slab = HW * 9 * Cp * 2
    blocks = HW * Kr * 2 + HW * Cp * 2 + HW * Np * 4
    weights = Kr * Cp * 2 + 9 * Cp * Hd * 2 + Hd * Np * 2 + (Cp + Hd + Np) * 4
    live = HW * Cp * 4 + HW * Hd * 4
    return 2 * (blocks + weights) + slab + live   # double-buffered blocks


# ----------------------------------------------------------------------------
# Plain-JAX / numpy glue (anchors, assignment, box math, losses)
# ----------------------------------------------------------------------------

def patchify(images_nchw, s):
    B, C, H, W = images_nchw.shape
    oh, ow = H // s, W // s
    x = jnp.transpose(images_nchw, (0, 2, 3, 1))              # NHWC
    x = x.reshape(B, oh, s, ow, s, C)
    x = jnp.transpose(x, (0, 1, 3, 2, 4, 5))                  # (B, oh, ow, s, s, C)
    return x.reshape(B, oh * ow, s * s * C), (B, oh, ow)


def _conv3x3_tap_masks(H, W):
    """(9, HW, 1) f32 validity mask per 3x3 tap, matching zero 'same' padding."""
    ys, xs = np.meshgrid(np.arange(H), np.arange(W), indexing='ij')
    ys, xs = ys.reshape(-1), xs.reshape(-1)
    masks = np.zeros((9, H * W, 1), np.float32)
    t = 0
    for dy in (-1, 0, 1):
        for dx in (-1, 0, 1):
            valid = ((ys + dy >= 0) & (ys + dy < H) &
                     (xs + dx >= 0) & (xs + dx < W))
            masks[t, :, 0] = valid.astype(np.float32)
            t += 1
    return jnp.asarray(masks)


def gen_anc_centers(out_size):
    out_h, out_w = out_size
    anc_pts_x = jnp.arange(out_w, dtype=jnp.float32) + 0.5
    anc_pts_y = jnp.arange(out_h, dtype=jnp.float32) + 0.5
    return anc_pts_x, anc_pts_y


def gen_anc_base(anc_pts_x, anc_pts_y, anc_scales, anc_ratios, out_size):
    out_h, out_w = out_size
    n_x, n_y = anc_pts_x.shape[0], anc_pts_y.shape[0]
    ws = jnp.array([s * r for s in anc_scales for r in anc_ratios], jnp.float32)
    hs = jnp.array([float(s) for s in anc_scales for _ in anc_ratios], jnp.float32)
    A = ws.shape[0]
    xc = anc_pts_x[:, None, None]
    yc = anc_pts_y[None, :, None]
    xmin = jnp.broadcast_to(xc - ws / 2, (n_x, n_y, A))
    ymin = jnp.broadcast_to(yc - hs / 2, (n_x, n_y, A))
    xmax = jnp.broadcast_to(xc + ws / 2, (n_x, n_y, A))
    ymax = jnp.broadcast_to(yc + hs / 2, (n_x, n_y, A))
    # torchvision ops.clip_boxes_to_image(size=(out_h, out_w))
    xmin = jnp.clip(xmin, 0.0, float(out_w))
    xmax = jnp.clip(xmax, 0.0, float(out_w))
    ymin = jnp.clip(ymin, 0.0, float(out_h))
    ymax = jnp.clip(ymax, 0.0, float(out_h))
    return jnp.stack([xmin, ymin, xmax, ymax], axis=-1)[None]  # (1, n_x, n_y, A, 4)


def project_bboxes(bboxes, width_scale_factor, height_scale_factor, mode='a2p'):
    assert mode in ('a2p', 'p2a')
    proj = bboxes.reshape(bboxes.shape[0], -1, 4)
    invalid = proj == -1
    scale = jnp.array([width_scale_factor, height_scale_factor,
                       width_scale_factor, height_scale_factor], jnp.float32)
    proj = proj * scale if mode == 'a2p' else proj / scale
    proj = jnp.where(invalid, -1.0, proj)
    return proj.reshape(bboxes.shape)


def box_iou_batched(anc, gt):
    area_a = (anc[..., 2] - anc[..., 0]) * (anc[..., 3] - anc[..., 1])  # (B, M)
    area_g = (gt[..., 2] - gt[..., 0]) * (gt[..., 3] - gt[..., 1])      # (B, N)
    lt = jnp.maximum(anc[:, :, None, :2], gt[:, None, :, :2])
    rb = jnp.minimum(anc[:, :, None, 2:], gt[:, None, :, 2:])
    wh = jnp.maximum(rb - lt, 0.0)
    inter = wh[..., 0] * wh[..., 1]
    union = area_a[:, :, None] + area_g[:, None, :] - inter
    return jnp.where(union > 0.0, inter / jnp.maximum(union, 1e-8), 0.0)


def xyxy_to_cxcywh(b):
    cx = (b[:, 0] + b[:, 2]) / 2.0
    cy = (b[:, 1] + b[:, 3]) / 2.0
    w = b[:, 2] - b[:, 0]
    h = b[:, 3] - b[:, 1]
    return jnp.stack([cx, cy, w, h], axis=-1)


def cxcywh_to_xyxy(b):
    return jnp.stack([b[:, 0] - b[:, 2] / 2.0, b[:, 1] - b[:, 3] / 2.0,
                      b[:, 0] + b[:, 2] / 2.0, b[:, 1] + b[:, 3] / 2.0], axis=-1)


def calc_gt_offsets(pos_anc_coords, gt_bbox_mapping):
    a = xyxy_to_cxcywh(jnp.asarray(pos_anc_coords))
    g = xyxy_to_cxcywh(jnp.asarray(gt_bbox_mapping))
    tx = (g[:, 0] - a[:, 0]) / a[:, 2]
    ty = (g[:, 1] - a[:, 1]) / a[:, 3]
    tw = jnp.log(g[:, 2] / a[:, 2])
    th = jnp.log(g[:, 3] / a[:, 3])
    return jnp.stack([tx, ty, tw, th], axis=-1)


def generate_proposals(anchors, offsets):
    a = xyxy_to_cxcywh(jnp.asarray(anchors))
    px = a[:, 0] + offsets[:, 0] * a[:, 2]
    py = a[:, 1] + offsets[:, 1] * a[:, 3]
    pw = a[:, 2] * jnp.exp(offsets[:, 2])
    ph = a[:, 3] * jnp.exp(offsets[:, 3])
    return cxcywh_to_xyxy(jnp.stack([px, py, pw, ph], axis=-1))


def get_req_anchors(anc_boxes_all, gt_bboxes_all, gt_classes_all,
                    pos_thresh=0.7, neg_thresh=0.2, rng=None):
    B, wa, ha, A, _ = anc_boxes_all.shape
    tot = wa * ha * A
    anc_flat = anc_boxes_all.reshape(B, -1, 4)
    iou = np.asarray(box_iou_batched(anc_flat, gt_bboxes_all))          # (B, tot, N)

    max_iou_per_gt = iou.max(axis=1, keepdims=True)
    pos_mask = np.logical_and(iou == max_iou_per_gt, max_iou_per_gt > 0)
    pos_mask = np.logical_or(pos_mask, iou > pos_thresh)
    positive_anc_ind_sep = np.where(pos_mask)[0]                        # batch ids
    pos_mask_flat = pos_mask.reshape(B * tot, -1)
    positive_anc_ind = np.where(pos_mask_flat)[0]

    max_iou_per_anc = iou.max(axis=-1)
    max_iou_per_anc_ind = iou.argmax(axis=-1)
    max_iou_flat = max_iou_per_anc.reshape(-1)
    GT_conf_scores = max_iou_flat[positive_anc_ind]

    gt_classes_np = np.asarray(gt_classes_all)
    GT_class = np.take_along_axis(gt_classes_np, max_iou_per_anc_ind, axis=1).reshape(-1)
    GT_class_pos = GT_class[positive_anc_ind]

    gt_b_np = np.asarray(gt_bboxes_all)
    idx4 = np.repeat(max_iou_per_anc_ind[..., None], 4, axis=-1)        # (B, tot, 4)
    GT_bboxes = np.take_along_axis(gt_b_np, idx4, axis=1).reshape(-1, 4)
    GT_bboxes_pos = GT_bboxes[positive_anc_ind]

    anc_flat_all = np.asarray(anc_flat).reshape(-1, 4)
    anc_boxes_pos = anc_flat_all[positive_anc_ind]
    GT_offsets = calc_gt_offsets(anc_boxes_pos, GT_bboxes_pos)

    neg_mask = max_iou_flat < neg_thresh
    negative_anc_ind = np.where(neg_mask)[0]
    rng = rng if rng is not None else np.random.default_rng(0)
    sel = rng.integers(0, negative_anc_ind.shape[0], size=positive_anc_ind.shape[0])
    negative_anc_ind = negative_anc_ind[sel]
    anc_boxes_neg = anc_flat_all[negative_anc_ind]

    return (positive_anc_ind, negative_anc_ind, GT_conf_scores, GT_offsets,
            GT_class_pos, jnp.asarray(anc_boxes_pos), anc_boxes_neg,
            positive_anc_ind_sep)


def calc_cls_loss(conf_scores_pos, conf_scores_neg, batch_size):
    inputs = jnp.concatenate([conf_scores_pos, conf_scores_neg])
    targets = jnp.concatenate([jnp.ones_like(conf_scores_pos),
                               jnp.zeros_like(conf_scores_neg)])
    # BCEWithLogits, reduction='sum'
    loss = (jnp.maximum(inputs, 0.0) - inputs * targets
            + jnp.log1p(jnp.exp(-jnp.abs(inputs))))
    return loss.sum() / batch_size


def calc_bbox_reg_loss(gt_offsets, reg_offsets_pos, batch_size):
    d = reg_offsets_pos - gt_offsets
    ad = jnp.abs(d)
    loss = jnp.where(ad < 1.0, 0.5 * d * d, ad - 0.5)   # smooth_l1, sum
    return loss.sum() / batch_size


# ----------------------------------------------------------------------------
# RegionProposalNetwork in JAX/Pallas
# ----------------------------------------------------------------------------

class RegionProposalNetworkPallas:
    def __init__(self, img_size, out_size, out_channels, hidden_dim=512, key=None):
        self.img_height, self.img_width = img_size
        self.out_h, self.out_w = out_size
        self.width_scale_factor = self.img_width // self.out_w
        self.height_scale_factor = self.img_height // self.out_h
        self.anc_scales = [2, 4, 6]
        self.anc_ratios = [0.5, 1, 1.5]
        self.n_anc_boxes = len(self.anc_scales) * len(self.anc_ratios)
        self.pos_thresh = 0.7
        self.neg_thresh = 0.3
        self.w_conf = 1
        self.w_reg = 5
        self.out_channels = out_channels
        self.hidden_dim = hidden_dim

        s = self.height_scale_factor
        assert s == self.width_scale_factor

        # TODO(synk): pretrained ResNet-50 backbone replaced by a synthetic
        # strided patchify-conv stem (Pallas matmul); no checkpoint is loaded.
        keys = jax.random.split(key if key is not None else jax.random.PRNGKey(0), 8)

        def init(k, shape, scale):
            return jax.random.normal(k, shape, jnp.float32) * scale

        C, Hd, A = out_channels, hidden_dim, self.n_anc_boxes
        w_bb = init(keys[0], (s, s, 3, C), 0.05)
        b_bb = init(keys[1], (1, C), 0.01)
        w1 = init(keys[2], (3, 3, C, Hd), 1.0 / np.sqrt(9 * C))
        self.b1 = init(keys[3], (1, Hd), 0.01)
        wc = init(keys[4], (Hd, A), 1.0 / np.sqrt(Hd))
        bc = init(keys[5], (1, A), 0.01)
        wr = init(keys[6], (Hd, A * 4), 0.02)
        br = init(keys[7], (1, A * 4), 0.001)

        # --- lane-dense, bf16 kernel-side parameter layouts -----------------
        self.c_pad = _round_up(C, LANE)           # feature channels padded to 128
        self.n_head = 5 * A                        # conf (A) | reg (4A) fused
        self.n_head_pad = _round_up(self.n_head, LANE)
        self.k_raw = s * s * 3
        self.hw = self.out_h * self.out_w

        self.w_bb_p = jnp.pad(w_bb.reshape(self.k_raw, C),
                              ((0, 0), (0, self.c_pad - C))).astype(jnp.bfloat16)
        self.b_bb_p = jnp.pad(b_bb, ((0, 0), (0, self.c_pad - C)))
        # 3x3 conv weights as one (9*Cpad, Hd) im2col weight slab
        w1_taps = jnp.pad(w1.reshape(9, C, Hd),
                          ((0, 0), (0, self.c_pad - C), (0, 0)))
        self.w1_slab_p = w1_taps.reshape(9 * self.c_pad, Hd).astype(jnp.bfloat16)
        wh = jnp.concatenate([wc, wr], axis=1)                     # (Hd, 5A)
        bh = jnp.concatenate([bc, br], axis=1)
        self.wh_p = jnp.pad(wh, ((0, 0), (0, self.n_head_pad - self.n_head))
                            ).astype(jnp.bfloat16)
        self.bh_p = jnp.pad(bh, ((0, 0), (0, self.n_head_pad - self.n_head)))

        # static 3x3 'same'-padding validity masks, (9, HW, 1) sublane-major
        self.tap_masks = _conv3x3_tap_masks(self.out_h, self.out_w)

        # path selection: fuse backbone + head into one kernel if it fits VMEM
        est = _fused_vmem_bytes(self.hw, self.k_raw, self.c_pad,
                                hidden_dim, self.n_head_pad)
        self.use_fused = est <= 20 * 1024 * 1024
        self.force_two_kernel = False              # for testing the fallback path

    # ---- device side: backbone stem + fused proposal head -------------------
    def _device_forward(self, images_nchw):
        s = self.height_scale_factor
        patches, (B, oh, ow) = patchify(images_nchw, s)
        patches = patches.astype(jnp.bfloat16)                     # (B, HW, Kr)
        if self.use_fused and not self.force_two_kernel:
            feat_bf, head = fused_rpn_forward(
                patches, self.w_bb_p, self.b_bb_p, self.tap_masks,
                self.w1_slab_p, self.b1, self.wh_p, self.bh_p,
                self.out_h, self.out_w)
        else:
            feat_flat = backbone_forward(
                patches.reshape(B * oh * ow, self.k_raw),
                self.w_bb_p, self.b_bb_p)                          # (M, Cpad) bf16
            feat_bf = feat_flat.reshape(B, oh * ow, self.c_pad)
            head = rpn_head_forward(
                feat_bf, self.tap_masks, self.w1_slab_p, self.b1,
                self.wh_p, self.bh_p, self.out_h, self.out_w)
        return feat_bf, head

    def forward(self, images, gt_bboxes, gt_classes):
        batch_size = images.shape[0]

        # Dispatch the Pallas kernel(s) first so the (blocking) host-side
        # anchor assignment below overlaps with device execution.
        feat_bf, head = self._device_forward(images)               # bf16 / f32
        A = self.n_anc_boxes
        conf = head[..., :A]                                       # (B, HW, A)
        reg = head[..., A:A + 4 * A]                               # (B, HW, 4A)
        # back to PyTorch NCHW convention so .flatten()/.view(-1,4) indexing
        # matches the reference ProposalModule exactly.
        conf_nchw = jnp.transpose(conf.reshape(batch_size, self.out_h, self.out_w, A),
                                  (0, 3, 1, 2))                    # (B, A, H, W)
        reg_nchw = jnp.transpose(reg.reshape(batch_size, self.out_h, self.out_w, 4 * A),
                                 (0, 3, 1, 2))                     # (B, 4A, H, W)
        feature_map = jnp.transpose(
            feat_bf[..., :self.out_channels].astype(jnp.float32).reshape(
                batch_size, self.out_h, self.out_w, self.out_channels),
            (0, 3, 1, 2))                                          # NCHW API boundary

        anc_pts_x, anc_pts_y = gen_anc_centers(out_size=(self.out_h, self.out_w))
        anc_base = gen_anc_base(anc_pts_x, anc_pts_y, self.anc_scales,
                                self.anc_ratios, (self.out_h, self.out_w))
        anc_boxes_all = jnp.broadcast_to(
            anc_base, (batch_size,) + anc_base.shape[1:])
        gt_bboxes_proj = project_bboxes(gt_bboxes, self.width_scale_factor,
                                        self.height_scale_factor, mode='p2a')

        (positive_anc_ind, negative_anc_ind, _, GT_offsets, GT_class_pos,
         positive_anc_coords, _, positive_anc_ind_sep) = get_req_anchors(
            anc_boxes_all, gt_bboxes_proj, gt_classes,
            pos_thresh=self.pos_thresh, neg_thresh=self.neg_thresh,
            rng=np.random.default_rng(0))

        # NOTE: the reference PyTorch code indexes the NCHW-flattened conf/reg
        # tensors with anchor-order indices; we reproduce that behavior 1:1.
        conf_flat = conf_nchw.reshape(-1)
        reg_rows = reg_nchw.reshape(-1, 4)
        conf_scores_pos = conf_flat[positive_anc_ind]
        conf_scores_neg = conf_flat[negative_anc_ind]
        offsets_pos = reg_rows[positive_anc_ind]
        proposals = generate_proposals(positive_anc_coords, offsets_pos)

        cls_loss = calc_cls_loss(conf_scores_pos, conf_scores_neg, batch_size)
        reg_loss = calc_bbox_reg_loss(GT_offsets, offsets_pos, batch_size)
        total_rpn_loss = self.w_conf * cls_loss + self.w_reg * reg_loss
        return (total_rpn_loss, feature_map, proposals,
                positive_anc_ind_sep, GT_class_pos)


# ----------------------------------------------------------------------------
# Main
# ----------------------------------------------------------------------------

if __name__ == "__main__":
    key = jax.random.PRNGKey(0)
    k_img, k_params = jax.random.split(key)

    B, IMG, OUT, C_FEAT = 2, 32, 4, 64
    images = jax.random.normal(k_img, (B, 3, IMG, IMG), jnp.float32)
    gt_bboxes = jnp.array(
        [[[4.0, 4.0, 20.0, 20.0], [10.0, 12.0, 30.0, 28.0]],
         [[2.0, 6.0, 18.0, 26.0], [16.0, 8.0, 30.0, 24.0]]], jnp.float32)
    gt_classes = jnp.array([[1, 2], [3, 1]], jnp.int32)

    rpn = RegionProposalNetworkPallas(
        img_size=(IMG, IMG), out_size=(OUT, OUT), out_channels=C_FEAT,
        hidden_dim=512, key=k_params)

    # primary (fused single-kernel) path
    total_loss, feature_map, proposals, pos_ind_sep, gt_class_pos = rpn.forward(
        images, gt_bboxes, gt_classes)
    jax.block_until_ready(total_loss)
    jax.block_until_ready(feature_map)
    jax.block_until_ready(proposals)

    assert feature_map.shape == (B, C_FEAT, OUT, OUT)
    assert proposals.shape[-1] == 4
    assert bool(jnp.isfinite(total_loss))
    assert bool(jnp.all(jnp.isfinite(feature_map)))

    # cross-check against the two-kernel fallback path (bf16 backbone + head)
    rpn.force_two_kernel = True
    total_loss2, feature_map2, proposals2, _, _ = rpn.forward(
        images, gt_bboxes, gt_classes)
    jax.block_until_ready(total_loss2)
    assert np.allclose(np.asarray(feature_map), np.asarray(feature_map2),
                       rtol=1e-3, atol=1e-3)
    assert np.allclose(np.asarray(proposals), np.asarray(proposals2),
                       rtol=1e-3, atol=1e-3)
    assert np.allclose(float(total_loss), float(total_loss2),
                       rtol=1e-3, atol=1e-3)

    print("KERNEL_OK")
</pallas_src>

<mosaic_0001>
module attributes {stable_mosaic.version = 11 : i64} {
  func.func @kernel(%arg0: i32, %arg1: memref<1x16x192xbf16, #tpu.memory_space<vmem>>, %arg2: memref<192x128xbf16, #tpu.memory_space<vmem>>, %arg3: memref<1x128xf32, #tpu.memory_space<vmem>>, %arg4: memref<9x16x1xf32, #tpu.memory_space<vmem>>, %arg5: memref<1152x512xbf16, #tpu.memory_space<vmem>>, %arg6: memref<1x512xf32, #tpu.memory_space<vmem>>, %arg7: memref<512x128xbf16, #tpu.memory_space<vmem>>, %arg8: memref<1x128xf32, #tpu.memory_space<vmem>>, %arg9: memref<1x16x128xbf16, #tpu.memory_space<vmem>>, %arg10: memref<1x16x128xf32, #tpu.memory_space<vmem>>, %arg11: memref<16x1152xbf16, #tpu.memory_space<vmem>>) attributes {dimension_semantics = [#tpu.dimension_semantics<parallel>], iteration_bounds = array<i64: 2>, scalar_prefetch = 0 : i64, scratch_operands = 1 : i64, tpu.core_type = #tpu.core_type<tc>, window_params = [{transform_indices = @transform_0, window_bounds = array<i64: 1, 16, 192>}, {pipeline_mode = #tpu.pipeline_mode<synchronous>, transform_indices = @transform_1, window_bounds = array<i64: 192, 128>}, {pipeline_mode = #tpu.pipeline_mode<synchronous>, transform_indices = @transform_2, window_bounds = array<i64: 1, 128>}, {pipeline_mode = #tpu.pipeline_mode<synchronous>, transform_indices = @transform_3, window_bounds = array<i64: 9, 16, 1>}, {pipeline_mode = #tpu.pipeline_mode<synchronous>, transform_indices = @transform_4, window_bounds = array<i64: 1152, 512>}, {pipeline_mode = #tpu.pipeline_mode<synchronous>, transform_indices = @transform_5, window_bounds = array<i64: 1, 512>}, {pipeline_mode = #tpu.pipeline_mode<synchronous>, transform_indices = @transform_6, window_bounds = array<i64: 512, 128>}, {pipeline_mode = #tpu.pipeline_mode<synchronous>, transform_indices = @transform_7, window_bounds = array<i64: 1, 128>}, {transform_indices = @transform_8, window_bounds = array<i64: 1, 16, 128>}, {transform_indices = @transform_9, window_bounds = array<i64: 1, 16, 128>}]} {
    %c0 = arith.constant 0 : index
    %c0_0 = arith.constant 0 : index
    %c0_1 = arith.constant 0 : index
    %0 = vector.load %arg1[%c0, %c0_0, %c0_1] : memref<1x16x192xbf16, #tpu.memory_space<vmem>>, vector<1x16x192xbf16>
    %1 = vector.shape_cast %0 : vector<1x16x192xbf16> to vector<16x192xbf16>
    %c0_2 = arith.constant 0 : index
    %c0_3 = arith.constant 0 : index
    %2 = vector.load %arg2[%c0_2, %c0_3] : memref<192x128xbf16, #tpu.memory_space<vmem>>, vector<192x128xbf16>
    %cst = arith.constant dense<0.000000e+00> : vector<16x128xf32>
    %3 = tpu.matmul %1, %2, %cst {dimension_numbers = #tpu.dot_dimension_numbers<[1], [0], [0], [1], [0, 0, 1, 1], [], []>} : vector<16x192xbf16>, vector<192x128xbf16>, vector<16x128xf32> -> vector<16x128xf32>
    %c0_4 = arith.constant 0 : index
    %c0_5 = arith.constant 0 : index
    %4 = vector.load %arg3[%c0_4, %c0_5] : memref<1x128xf32, #tpu.memory_space<vmem>>, vector<1x128xf32>
    %5 = vector.broadcast %4 : vector<1x128xf32> to vector<16x128xf32>
    %6 = arith.addf %3, %5 : vector<16x128xf32>
    %7 = arith.truncf %6 : vector<16x128xf32> to vector<16x128xbf16>
    %c0_6 = arith.constant 0 : index
    %c0_7 = arith.constant 0 : index
    %c0_8 = arith.constant 0 : index
    %8 = vector.load %arg9[%c0_6, %c0_7, %c0_8] : memref<1x16x128xbf16, #tpu.memory_space<vmem>>, vector<1x16x128xbf16>
    %9 = vector.shape_cast %8 : vector<1x16x128xbf16> to vector<16x128xbf16>
    %10 = vector.shape_cast %7 : vector<16x128xbf16> to vector<1x16x128xbf16>
    tpu.vector_store %arg9[%c0_6, %c0_7, %c0_8], %10 {strides = array<i32>} : memref<1x16x128xbf16, #tpu.memory_space<vmem>>, vector<1x16x128xbf16>,
    %c5_i32 = arith.constant 5 : i32
    %11 = tpu.dynamic_rotate %6 by %c5_i32 dim 0 : vector<16x128xf32>, i32 -> vector<16x128xf32>
    %c0_9 = arith.constant 0 : index
    %c0_10 = arith.constant 0 : index
    %c0_11 = arith.constant 0 : index
    %12 = vector.load %arg4[%c0_9, %c0_10, %c0_11] : memref<9x16x1xf32, #tpu.memory_space<vmem>>, vector<1x16x1xf32>
    %13 = vector.shape_cast %12 : vector<1x16x1xf32> to vector<16x1xf32>
    %14 = vector.broadcast %13 : vector<16x1xf32> to vector<16x128xf32>
    %15 = arith.mulf %11, %14 : vector<16x128xf32>
    %16 = arith.truncf %15 : vector<16x128xf32> to vector<16x128xbf16>
    %c0_12 = arith.constant 0 : index
    %c0_13 = arith.constant 0 : index
    %17 = vector.load %arg11[%c0_12, %c0_13] : memref<16x1152xbf16, #tpu.memory_space<vmem>>, vector<16x128xbf16>
    tpu.vector_store %arg11[%c0_12, %c0_13], %16 {strides = array<i32>} : memref<16x1152xbf16, #tpu.memory_space<vmem>>, vector<16x128xbf16>,
    %c4_i32 = arith.constant 4 : i32
    %18 = tpu.dynamic_rotate %6 by %c4_i32 dim 0 : vector<16x128xf32>, i32 -> vector<16x128xf32>
    %c1 = arith.constant 1 : index
    %c0_14 = arith.constant 0 : index
    %c0_15 = arith.constant 0 : index
    %19 = vector.load %arg4[%c1, %c0_14, %c0_15] : memref<9x16x1xf32, #tpu.memory_space<vmem>>, vector<1x16x1xf32>
    %20 = vector.shape_cast %19 : vector<1x16x1xf32> to vector<16x1xf32>
    %21 = vector.broadcast %20 : vector<16x1xf32> to vector<16x128xf32>
    %22 = arith.mulf %18, %21 : vector<16x128xf32>
    %23 = arith.truncf %22 : vector<16x128xf32> to vector<16x128xbf16>
    %c0_16 = arith.constant 0 : index
    %c128 = arith.constant 128 : index
    %24 = vector.load %arg11[%c0_16, %c128] : memref<16x1152xbf16, #tpu.memory_space<vmem>>, vector<16x128xbf16>
    tpu.vector_store %arg11[%c0_16, %c128], %23 {strides = array<i32>} : memref<16x1152xbf16, #tpu.memory_space<vmem>>, vector<16x128xbf16>,
    %c3_i32 = arith.constant 3 : i32
    %25 = tpu.dynamic_rotate %6 by %c3_i32 dim 0 : vector<16x128xf32>, i32 -> vector<16x128xf32>
    %c2 = arith.constant 2 : index
    %c0_17 = arith.constant 0 : index
    %c0_18 = arith.constant 0 : index
    %26 = vector.load %arg4[%c2, %c0_17, %c0_18] : memref<9x16x1xf32, #tpu.memory_space<vmem>>, vector<1x16x1xf32>
    %27 = vector.shape_cast %26 : vector<1x16x1xf32> to vector<16x1xf32>
    %28 = vector.broadcast %27 : vector<16x1xf32> to vector<16x128xf32>
    %29 = arith.mulf %25, %28 : vector<16x128xf32>
    %30 = arith.truncf %29 : vector<16x128xf32> to vector<16x128xbf16>
    %c0_19 = arith.constant 0 : index
    %c256 = arith.constant 256 : index
    %31 = vector.load %arg11[%c0_19, %c256] : memref<16x1152xbf16, #tpu.memory_space<vmem>>, vector<16x128xbf16>
    tpu.vector_store %arg11[%c0_19, %c256], %30 {strides = array<i32>} : memref<16x1152xbf16, #tpu.memory_space<vmem>>, vector<16x128xbf16>,
    %c1_i32 = arith.constant 1 : i32
    %32 = tpu.dynamic_rotate %6 by %c1_i32 dim 0 : vector<16x128xf32>, i32 -> vector<16x128xf32>
    %c3 = arith.constant 3 : index
    %c0_20 = arith.constant 0 : index
    %c0_21 = arith.constant 0 : index
    %33 = vector.load %arg4[%c3, %c0_20, %c0_21] : memref<9x16x1xf32, #tpu.memory_space<vmem>>, vector<1x16x1xf32>
    %34 = vector.shape_cast %33 : vector<1x16x1xf32> to vector<16x1xf32>
    %35 = vector.broadcast %34 : vector<16x1xf32> to vector<16x128xf32>
    %36 = arith.mulf %32, %35 : vector<16x128xf32>
    %37 = arith.truncf %36 : vector<16x128xf32> to vector<16x128xbf16>
    %c0_22 = arith.constant 0 : index
    %c384 = arith.constant 384 : index
    %38 = vector.load %arg11[%c0_22, %c384] : memref<16x1152xbf16, #tpu.memory_space<vmem>>, vector<16x128xbf16>
    tpu.vector_store %arg11[%c0_22, %c384], %37 {strides = array<i32>} : memref<16x1152xbf16, #tpu.memory_space<vmem>>, vector<16x128xbf16>,
    %c4 = arith.constant 4 : index
    %c0_23 = arith.constant 0 : index
    %c0_24 = arith.constant 0 : index
    %39 = vector.load %arg4[%c4, %c0_23, %c0_24] : memref<9x16x1xf32, #tpu.memory_space<vmem>>, vector<1x16x1xf32>
    %40 = vector.shape_cast %39 : vector<1x16x1xf32> to vector<16x1xf32>
    %41 = vector.broadcast %40 : vector<16x1xf32> to vector<16x128xf32>
    %42 = arith.mulf %6, %41 : vector<16x128xf32>
    %43 = arith.truncf %42 : vector<16x128xf32> to vector<16x128xbf16>
    %c0_25 = arith.constant 0 : index
    %c512 = arith.constant 512 : index
    %44 = vector.load %arg11[%c0_25, %c512] : memref<16x1152xbf16, #tpu.memory_space<vmem>>, vector<16x128xbf16>
    tpu.vector_store %arg11[%c0_25, %c512], %43 {strides = array<i32>} : memref<16x1152xbf16, #tpu.memory_space<vmem>>, vector<16x128xbf16>,
    %c15_i32 = arith.constant 15 : i32
    %45 = tpu.dynamic_rotate %6 by %c15_i32 dim 0 : vector<16x128xf32>, i32 -> vector<16x128xf32>
    %c5 = arith.constant 5 : index
    %c0_26 = arith.constant 0 : index
    %c0_27 = arith.constant 0 : index
    %46 = vector.load %arg4[%c5, %c0_26, %c0_27] : memref<9x16x1xf32, #tpu.memory_space<vmem>>, vector<1x16x1xf32>
    %47 = vector.shape_cast %46 : vector<1x16x1xf32> to vector<16x1xf32>
    %48 = vector.broadcast %47 : vector<16x1xf32> to vector<16x128xf32>
    %49 = arith.mulf %45, %48 : vector<16x128xf32>
    %50 = arith.truncf %49 : vector<16x128xf32> to vector<16x128xbf16>
    %c0_28 = arith.constant 0 : index
    %c640 = arith.constant 640 : index
    %51 = vector.load %arg11[%c0_28, %c640] : memref<16x1152xbf16, #tpu.memory_space<vmem>>, vector<16x128xbf16>
    tpu.vector_store %arg11[%c0_28, %c640], %50 {strides = array<i32>} : memref<16x1152xbf16, #tpu.memory_space<vmem>>, vector<16x128xbf16>,
    %c13_i32 = arith.constant 13 : i32
    %52 = tpu.dynamic_rotate %6 by %c13_i32 dim 0 : vector<16x128xf32>, i32 -> vector<16x128xf32>
    %c6 = arith.constant 6 : index
    %c0_29 = arith.constant 0 : index
    %c0_30 = arith.constant 0 : index
    %53 = vector.load %arg4[%c6, %c0_29, %c0_30] : memref<9x16x1xf32, #tpu.memory_space<vmem>>, vector<1x16x1xf32>
    %54 = vector.shape_cast %53 : vector<1x16x1xf32> to vector<16x1xf32>
    %55 = vector.broadcast %54 : vector<16x1xf32> to vector<16x128xf32>
    %56 = arith.mulf %52, %55 : vector<16x128xf32>
    %57 = arith.truncf %56 : vector<16x128xf32> to vector<16x128xbf16>
    %c0_31 = arith.constant 0 : index
    %c768 = arith.constant 768 : index
    %58 = vector.load %arg11[%c0_31, %c768] : memref<16x1152xbf16, #tpu.memory_space<vmem>>, vector<16x128xbf16>
    tpu.vector_store %arg11[%c0_31, %c768], %57 {strides = array<i32>} : memref<16x1152xbf16, #tpu.memory_space<vmem>>, vector<16x128xbf16>,
    %c12_i32 = arith.constant 12 : i32
    %59 = tpu.dynamic_rotate %6 by %c12_i32 dim 0 : vector<16x128xf32>, i32 -> vector<16x128xf32>
    %c7 = arith.constant 7 : index
    %c0_32 = arith.constant 0 : index
    %c0_33 = arith.constant 0 : index
    %60 = vector.load %arg4[%c7, %c0_32, %c0_33] : memref<9x16x1xf32, #tpu.memory_space<vmem>>, vector<1x16x1xf32>
    %61 = vector.shape_cast %60 : vector<1x16x1xf32> to vector<16x1xf32>
    %62 = vector.broadcast %61 : vector<16x1xf32> to vector<16x128xf32>
    %63 = arith.mulf %59, %62 : vector<16x128xf32>
    %64 = arith.truncf %63 : vector<16x128xf32> to vector<16x128xbf16>
    %c0_34 = arith.constant 0 : index
    %c896 = arith.constant 896 : index
    %65 = vector.load %arg11[%c0_34, %c896] : memref<16x1152xbf16, #tpu.memory_space<vmem>>, vector<16x128xbf16>
    tpu.vector_store %arg11[%c0_34, %c896], %64 {strides = array<i32>} : memref<16x1152xbf16, #tpu.memory_space<vmem>>, vector<16x128xbf16>,
    %c11_i32 = arith.constant 11 : i32
    %66 = tpu.dynamic_rotate %6 by %c11_i32 dim 0 : vector<16x128xf32>, i32 -> vector<16x128xf32>
    %c8 = arith.constant 8 : index
    %c0_35 = arith.constant 0 : index
    %c0_36 = arith.constant 0 : index
    %67 = vector.load %arg4[%c8, %c0_35, %c0_36] : memref<9x16x1xf32, #tpu.memory_space<vmem>>, vector<1x16x1xf32>
    %68 = vector.shape_cast %67 : vector<1x16x1xf32> to vector<16x1xf32>
    %69 = vector.broadcast %68 : vector<16x1xf32> to vector<16x128xf32>
    %70 = arith.mulf %66, %69 : vector<16x128xf32>
    %71 = arith.truncf %70 : vector<16x128xf32> to vector<16x128xbf16>
    %c0_37 = arith.constant 0 : index
    %c1024 = arith.constant 1024 : index
    %72 = vector.load %arg11[%c0_37, %c1024] : memref<16x1152xbf16, #tpu.memory_space<vmem>>, vector<16x128xbf16>
    tpu.vector_store %arg11[%c0_37, %c1024], %71 {strides = array<i32>} : memref<16x1152xbf16, #tpu.memory_space<vmem>>, vector<16x128xbf16>,
    %c0_38 = arith.constant 0 : index
    %c0_39 = arith.constant 0 : index
    %73 = vector.load %arg11[%c0_38, %c0_39] : memref<16x1152xbf16, #tpu.memory_space<vmem>>, vector<16x1152xbf16>
    %c0_40 = arith.constant 0 : index
    %c0_41 = arith.constant 0 : index
    %74 = vector.load %arg5[%c0_40, %c0_41] : memref<1152x512xbf16, #tpu.memory_space<vmem>>, vector<1152x512xbf16>
    %cst_42 = arith.constant dense<0.000000e+00> : vector<16x512xf32>
    %75 = tpu.matmul %73, %74, %cst_42 {dimension_numbers = #tpu.dot_dimension_numbers<[1], [0], [0], [1], [0, 0, 1, 1], [], []>} : vector<16x1152xbf16>, vector<1152x512xbf16>, vector<16x512xf32> -> vector<16x512xf32>
    %c0_43 = arith.constant 0 : index
    %c0_44 = arith.constant 0 : index
    %76 = vector.load %arg6[%c0_43, %c0_44] : memref<1x512xf32, #tpu.memory_space<vmem>>, vector<1x512xf32>
    %77 = vector.broadcast %76 : vector<1x512xf32> to vector<16x512xf32>
    %78 = arith.addf %75, %77 : vector<16x512xf32>
    %cst_45 = arith.constant 0.000000e+00 : f32
    %79 = vector.broadcast %cst_45 : f32 to vector<16x512xf32>
    %80 = arith.maximumf %78, %79 : vector<16x512xf32>
    %81 = arith.truncf %80 : vector<16x512xf32> to vector<16x512xbf16>
    %c0_46 = arith.constant 0 : index
    %c0_47 = arith.constant 0 : index
    %82 = vector.load %arg7[%c0_46, %c0_47] : memref<512x128xbf16, #tpu.memory_space<vmem>>, vector<512x128xbf16>
    %cst_48 = arith.constant dense<0.000000e+00> : vector<16x128xf32>
    %83 = tpu.matmul %81, %82, %cst_48 {dimension_numbers = #tpu.dot_dimension_numbers<[1], [0], [0], [1], [0, 0, 1, 1], [], []>} : vector<16x512xbf16>, vector<512x128xbf16>, vector<16x128xf32> -> vector<16x128xf32>
    %c0_49 = arith.constant 0 : index
    %c0_50 = arith.constant 0 : index
    %84 = vector.load %arg8[%c0_49, %c0_50] : memref<1x128xf32, #tpu.memory_space<vmem>>, vector<1x128xf32>
    %85 = vector.broadcast %84 : vector<1x128xf32> to vector<16x128xf32>
    %86 = arith.addf %83, %85 : vector<16x128xf32>
    %c0_51 = arith.constant 0 : index
    %c0_52 = arith.constant 0 : index
    %c0_53 = arith.constant 0 : index
    %87 = vector.load %arg10[%c0_51, %c0_52, %c0_53] : memref<1x16x128xf32, #tpu.memory_space<vmem>>, vector<1x16x128xf32>
    %88 = vector.shape_cast %87 : vector<1x16x128xf32> to vector<16x128xf32>
    %89 = vector.shape_cast %86 : vector<16x128xf32> to vector<1x16x128xf32>
    tpu.vector_store %arg10[%c0_51, %c0_52, %c0_53], %89 {strides = array<i32>} : memref<1x16x128xf32, #tpu.memory_space<vmem>>, vector<1x16x128xf32>,
    return
  }
  func.func @transform_0(%arg0: i32) -> (i32, i32, i32) {
    %c0_i32 = arith.constant 0 : i32
    %c0_i32_0 = arith.constant 0 : i32
    %c0_i32_1 = arith.constant 0 : i32
    return %arg0, %c0_i32, %c0_i32_0 : i32, i32, i32
  }
  func.func @transform_1(%arg0: i32) -> (i32, i32) {
    %c0_i32 = arith.constant 0 : i32
    %c0_i32_0 = arith.constant 0 : i32
    %c0_i32_1 = arith.constant 0 : i32
    return %c0_i32, %c0_i32_0 : i32, i32
  }
  func.func @transform_2(%arg0: i32) -> (i32, i32) {
    %c0_i32 = arith.constant 0 : i32
    %c0_i32_0 = arith.constant 0 : i32
    %c0_i32_1 = arith.constant 0 : i32
    return %c0_i32, %c0_i32_0 : i32, i32
  }
  func.func @transform_3(%arg0: i32) -> (i32, i32, i32) {
    %c0_i32 = arith.constant 0 : i32
    %c0_i32_0 = arith.constant 0 : i32
    %c0_i32_1 = arith.constant 0 : i32
    %c0_i32_2 = arith.constant 0 : i32
    return %c0_i32, %c0_i32_0, %c0_i32_1 : i32, i32, i32
  }
  func.func @transform_4(%arg0: i32) -> (i32, i32) {
    %c0_i32 = arith.constant 0 : i32
    %c0_i32_0 = arith.constant 0 : i32
    %c0_i32_1 = arith.constant 0 : i32
    return %c0_i32, %c0_i32_0 : i32, i32
  }
  func.func @transform_5(%arg0: i32) -> (i32, i32) {
    %c0_i32 = arith.constant 0 : i32
    %c0_i32_0 = arith.constant 0 : i32
    %c0_i32_1 = arith.constant 0 : i32
    return %c0_i32, %c0_i32_0 : i32, i32
  }
  func.func @transform_6(%arg0: i32) -> (i32, i32) {
    %c0_i32 = arith.constant 0 : i32
    %c0_i32_0 = arith.constant 0 : i32
    %c0_i32_1 = arith.constant 0 : i32
    return %c0_i32, %c0_i32_0 : i32, i32
  }
  func.func @transform_7(%arg0: i32) -> (i32, i32) {
    %c0_i32 = arith.constant 0 : i32
    %c0_i32_0 = arith.constant 0 : i32
    %c0_i32_1 = arith.constant 0 : i32
    return %c0_i32, %c0_i32_0 : i32, i32
  }
  func.func @transform_8(%arg0: i32) -> (i32, i32, i32) {
    %c0_i32 = arith.constant 0 : i32
    %c0_i32_0 = arith.constant 0 : i32
    %c0_i32_1 = arith.constant 0 : i32
    return %arg0, %c0_i32, %c0_i32_0 : i32, i32, i32
  }
  func.func @transform_9(%arg0: i32) -> (i32, i32, i32) {
    %c0_i32 = arith.constant 0 : i32
    %c0_i32_0 = arith.constant 0 : i32
    %c0_i32_1 = arith.constant 0 : i32
    return %arg0, %c0_i32, %c0_i32_0 : i32, i32, i32
  }
}

</mosaic_0001>

<bundles_post_ra>
// kernel: tpu_custom_call.1
= control target key start
LH: loop header
LB: loop body
LE: loop exit
PB: predicated region body
PF: predicated region fallthrough
CT: control target
= control target key end

     0   :  { %s5524_s0 = inlined_call_operand.hbm [shape: bf16[2,16,192], index: 0, kind: input, shape index: {}]   ;;  %s5525_s1 = inlined_call_operand.hbm [shape: bf16[192,128], index: 1, kind: input, shape index: {}]   ;;  %s5526_s2 = inlined_call_operand.hbm [shape: f32[1,128], index: 2, kind: input, shape index: {}]   ;;  %s5527_s3 = inlined_call_operand.vmem [shape: f32[9,16,1], index: 3, kind: input, shape index: {}]   ;;  %s5528_s4 = inlined_call_operand.hbm [shape: bf16[1152,512], index: 4, kind: input, shape index: {}]   ;;  %s5529_s5 = inlined_call_operand.hbm [shape: f32[1,512], index: 5, kind: input, shape index: {}]   ;;  %s5530_s6 = inlined_call_operand.hbm [shape: bf16[512,128], index: 6, kind: input, shape index: {}]   ;;  %s5531_s7 = inlined_call_operand.hbm [shape: f32[1,128], index: 7, kind: input, shape index: {}]   ;;  %s5532_s8 = inlined_call_operand.hbm [shape: bf16[2,16,128], index: 8, kind: output, shape index: {0}]   ;;  %s5533_s9 = inlined_call_operand.hbm [shape: f32[2,16,128], index: 9, kind: output, shape index: {1}]  }
   0x1   :  { %5539 = sst [smem:[#allocation24_spill]] %s5525_s1 }
   0x2   :  { %5540 = sst [smem:[#allocation25_spill]] %s5533_s9 }
   0x3   :  { %15 = vsyncpa [#allocation4], 0 }
   0x4   :  { %17 = vsyncpa [#allocation4 + $0x1], 0 }
   0x5   :  { %18 = vsyncpa [#allocation7], 0 }
   0x6   :  { %19 = vsyncpa [#allocation10], 0 }
   0x7   :  { %20 = vsyncpa [#allocation13], 0 }
   0x8   :  { %21 = vsyncpa [#allocation5], 0 }
   0x9   :  { %23 = vsyncpa [#allocation5 + $0x1], 0 }
   0xa   :  { %24 = vsyncpa [#allocation17], 0 }
   0xb   :  { %26 = vsyncpa [#allocation17 + $0x1], 0  ;;  %s5000_s30 = smov 0   ;;  %s5002_s10 = smov 0  }
   0xc   :  { %s5004_s11 = smov 0   ;;  %s5006_s12 = smov 0  }
   0xd LB: > { %s4930_s13 = smov [#allocation6]   ;;  %s5021_s15 = sadd.s32 4294967295, %s4928_s12   ;;  %s4928_s12 = sphi %s5006_s12, %s5566_s12   ;;  %s4924_s11 = sphi %s5004_s11, %s5565_s11   ;;  %s4920_s10 = sphi %s5002_s10, %s5564_s10   ;;  %s4916_s30 = sphi %s5000_s30, %s5563_s30  }
   0xe   : > { %s274_s14 = sshll.u32 %s4930_s13, 4  ;;  %p3538_p0 = scmp.ge.s32.totalorder %s4928_s12, 1  ;;  %s5026_s14 = int_to_ptr.vmem [resolvable:$true] %s274_s14 }
   0xf   : > { %p5536_p1 = scmp.eq.s32.totalorder %s5021_s15, 0  ;;  %p262_p2 = scmp.lt.s32.totalorder %s4928_s12, 3 }
  0x10   : > { %s4931_s17 = smov [#allocation9]   ;;  %s4932_s20 = smov [#allocation12]  }
  0x11   : > { %p5028_p3 = pnand %p3538_p0, %p262_p2  ;;  %s301_s18 = sshll.u32 %s4931_s17, 4  ;;  %s5041_s18 = int_to_ptr.vmem [resolvable:$true] %s301_s18 }
  0x12   : > { %s5043_s21 = sshll.u32 %s4932_s20, 4  ;;  %s5543_s1 = sld [smem:[#allocation24_spill]]  ;;  %s326_s21 = int_to_ptr.vmem [resolvable:$true] %s5043_s21 }
  0x13   : > { %s5541_s16 = scalar_select %p5028_p3, 1, 0 }
  0x14   : > { %p4046_p5 = pneg %p5028_p3 }
  0x16   : > { %p5037_p6 = pnand %p4046_p5, %p5536_p1 }
  0x18   : > { %s4620_s24 = scalar_lea.hbm %s5543_s1, 1536  ;;  %p5053_p8 = pneg %p5037_p6 }
  0x19   : > { %p4621_p7 = scmp.ne.s32.totalorder %s5543_s1, %s4620_s24  ;;  %p4627_p11 = scmp.lt.u32.totalorder %s4620_s24, %s5543_s1 }
  0x1b   : > { %p4623_p9 = pnand %p5053_p8, %p4621_p7 }
  0x1d   : > { %p4624_p10 = pneg %p4623_p9 }
  0x1f   : > { %p4629_p12 = pnand %p4627_p11, %p4624_p10 }
  0x21   : > { %4632 = shalt.err (!%p4629_p12)
}
  0x22   : > { %s4633_s13 = scalar_lea.vmem %s5026_s14, 1536  ;;  %p4641_p5 = scmp.lt.s32.totalorder %s5026_s14, %s5026_s14 }
  0x23   : > { %p4634_p13 = scmp.ne.s32.totalorder %s5026_s14, %s4633_s13  ;;  %p4642_p4 = scmp.lt.s32.totalorder %s4633_s13, %s4633_s13 }
  0x25   : > { %p4636_p0 = pnand %p4634_p13, %p5053_p8  ;;  %p4643_p7 = por %p4642_p4, %p4641_p5 }
  0x27   : > { %p4637_p2 = pneg %p4636_p0 }
  0x29   : > { %p4644_p9 = pnand %p4643_p7, %p4637_p2 }
  0x2b   : > { %4647 = shalt.err (!%p4644_p9)
}
  0x2c   : > { %s5535_s17 = smov 64   ;;  %s4934_s20 = smov 4  }
  0x2d   : > { %4049 = dma.hbm_to_vmem [thread:$0]  (!%p5037_p6), %s5543_s1, 1536, %s5026_s14, [#allocation7], %s5535_s17, %s5535_s17, %s4934_s20  }
  0x2e   : > { %s4648_s26 = scalar_lea.hbm %s5528_s4, 36864 }
  0x2f   : > { %p4649_p4 = scmp.ne.s32.totalorder %s5528_s4, %s4648_s26  ;;  %p4655_p12 = scmp.lt.u32.totalorder %s4648_s26, %s5528_s4 }
  0x31   : > { %p4651_p10 = pnand %p4649_p4, %p5053_p8 }
  0x33   : > { %p4652_p11 = pneg %p4651_p10 }
  0x35   : > { %p4657_p13 = pnand %p4655_p12, %p4652_p11 }
  0x37   : > { %4660 = shalt.err (!%p4657_p13)
}
  0x38   : > { %s4661_s14 = scalar_lea.vmem %s5041_s18, 36864  ;;  %p4669_p7 = scmp.lt.s32.totalorder %s5041_s18, %s5041_s18 }
  0x39   : > { %p4662_p0 = scmp.ne.s32.totalorder %s5041_s18, %s4661_s14  ;;  %p4670_p9 = scmp.lt.s32.totalorder %s4661_s14, %s4661_s14 }
  0x3b   : > { %p4664_p2 = pnand %p4662_p0, %p5053_p8  ;;  %p4671_p4 = por %p4670_p9, %p4669_p7 }
  0x3d   : > { %p4665_p5 = pneg %p4664_p2 }
  0x3f   : > { %p4672_p10 = pnand %p4671_p4, %p4665_p5 }
  0x41   : > { %4675 = shalt.err (!%p4672_p10)
}
  0x42   : > { %s4935_s22 = smov 256   ;;  %s4936_s9 = smov 16  }
  0x43   : > { %4055 = dma.hbm_to_vmem [thread:$0]  (!%p5037_p6), %s5528_s4, 36864, %s5041_s18, [#allocation10], %s4935_s22, %s4935_s22, %s4936_s9  }
  0x44   : > { %s4676_s28 = scalar_lea.hbm %s5530_s6, 4096 }
  0x45   : > { %p4677_p11 = scmp.ne.s32.totalorder %s5530_s6, %s4676_s28  ;;  %p4683_p0 = scmp.lt.u32.totalorder %s4676_s28, %s5530_s6 }
  0x47   : > { %p4679_p12 = pnand %p4677_p11, %p5053_p8 }
  0x49   : > { %p4680_p13 = pneg %p4679_p12 }
  0x4b   : > { %p4685_p2 = pnand %p4683_p0, %p4680_p13 }
  0x4d   : > { %4688 = shalt.err (!%p4685_p2)
}
  0x4e   : > { %s4689_s23 = scalar_lea.vmem %s326_s21, 4096  ;;  %p4697_p4 = scmp.lt.s32.totalorder %s326_s21, %s326_s21 }
  0x4f   : > { %p4690_p5 = scmp.ne.s32.totalorder %s326_s21, %s4689_s23  ;;  %p4698_p10 = scmp.lt.s32.totalorder %s4689_s23, %s4689_s23 }
  0x51   : > { %p4692_p7 = pnand %p4690_p5, %p5053_p8  ;;  %p4699_p1 = por %p4698_p10, %p4697_p4 }
  0x53   : > { %p4693_p9 = pneg %p4692_p7 }
  0x55   : > { %p4700_p3 = pnand %p4699_p1, %p4693_p9 }
  0x57   : > { %4703 = shalt.err (!%p4700_p3)
}
  0x58   : > { %s5545_s18 = smov 64   ;;  %s4937_s9 = smov [#allocation8]  }
  0x59   : > { %4061 = dma.hbm_to_vmem [thread:$0]  (!%p5037_p6), %s5530_s6, 4096, %s326_s21, [#allocation13], %s5545_s18, %s5545_s18, %s4934_s20  }
  0x5a   : > { %s288_s24 = sshll.u32 %s4937_s9, 4  ;;  %s4938_s25 = smov [#allocation11]   ;;  %s289_s24 = int_to_ptr.vmem [resolvable:$true] %s288_s24 }
  0x5b   : > { %s315_s26 = sshll.u32 %s4938_s25, 4  ;;  %s4704_s13 = scalar_lea.hbm %s5526_s2, 16  ;;  %s316_s26 = int_to_ptr.vmem [resolvable:$true] %s315_s26 }
  0x5c   : > { %p4705_p1 = scmp.ne.s32.totalorder %s5526_s2, %s4704_s13  ;;  %p4711_p12 = scmp.lt.u32.totalorder %s4704_s13, %s5526_s2 }
  0x5e   : > { %p4707_p3 = pnand %p4705_p1, %p5053_p8 }
  0x60   : > { %p4708_p11 = pneg %p4707_p3 }
  0x62   : > { %p4713_p13 = pnand %p4711_p12, %p4708_p11 }
  0x64   : > { %4716 = shalt.err (!%p4713_p13)
}
  0x65   : > { %s4717_s21 = scalar_lea.vmem %s289_s24, 16  ;;  %s4724_s20 = scalar_lea.vmem %s289_s24, 32 }
  0x66   : > { %p4718_p0 = scmp.ne.s32.totalorder %s289_s24, %s4717_s21  ;;  %p4725_p7 = scmp.lt.s32.totalorder %s289_s24, %s289_s24 }
  0x67   : > { %p4726_p9 = scmp.lt.s32.totalorder %s4724_s20, %s4717_s21 }
  0x68   : > { %p4720_p2 = pnand %p4718_p0, %p5053_p8 }
  0x69   : > { %p4727_p4 = por %p4726_p9, %p4725_p7 }
  0x6a   : > { %p4721_p5 = pneg %p4720_p2 }
  0x6c   : > { %p4728_p10 = pnand %p4727_p4, %p4721_p5 }
  0x6e   : > { %4731 = shalt.err (!%p4728_p10)
}
  0x6f   : > { %4052 = dma.hbm_to_vmem [thread:$0]  (!%p5037_p6), %s5526_s2, 16, %s289_s24, [#allocation7]  }
  0x70   : > { %s4732_s25 = scalar_lea.hbm %s5529_s5, 64 }
  0x71   : > { %p4733_p1 = scmp.ne.s32.totalorder %s5529_s5, %s4732_s25  ;;  %p4739_p12 = scmp.lt.u32.totalorder %s4732_s25, %s5529_s5 }
  0x73   : > { %p4735_p3 = pnand %p4733_p1, %p5053_p8 }
  0x75   : > { %p4736_p11 = pneg %p4735_p3 }
  0x77   : > { %p4741_p13 = pnand %p4739_p12, %p4736_p11 }
  0x79   : > { %4744 = shalt.err (!%p4741_p13)
}
  0x7a   : > { %s4745_s23 = scalar_lea.vmem %s316_s26, 64  ;;  %p4753_p7 = scmp.lt.s32.totalorder %s316_s26, %s316_s26 }
  0x7b   : > { %p4746_p0 = scmp.ne.s32.totalorder %s316_s26, %s4745_s23  ;;  %p4754_p9 = scmp.lt.s32.totalorder %s4745_s23, %s4745_s23 }
  0x7d   : > { %p4748_p2 = pnand %p4746_p0, %p5053_p8  ;;  %p4755_p4 = por %p4754_p9, %p4753_p7 }
  0x7f   : > { %p4749_p5 = pneg %p4748_p2 }
  0x81   : > { %p4756_p10 = pnand %p4755_p4, %p4749_p5 }
  0x83   : > { %4759 = shalt.err (!%p4756_p10)
}
  0x84   : > { %4058 = dma.hbm_to_vmem [thread:$0]  (!%p5037_p6), %s5529_s5, 64, %s316_s26, [#allocation10]  }
  0x85   : > { %s4939_s21 = smov [#allocation14]   ;;  %s4760_s1 = scalar_lea.hbm %s5531_s7, 16 }
  0x86   : > { %s339_s20 = sshll.u32 %s4939_s21, 4  ;;  %p4761_p1 = scmp.ne.s32.totalorder %s5531_s7, %s4760_s1  ;;  %s340_s20 = int_to_ptr.vmem [resolvable:$true] %s339_s20 }
  0x87   : > { %p4767_p12 = scmp.lt.u32.totalorder %s4760_s1, %s5531_s7 }
  0x88   : > { %p4763_p3 = pnand %p4761_p1, %p5053_p8 }
  0x8a   : > { %p4764_p11 = pneg %p4763_p3 }
  0x8c   : > { %p4769_p13 = pnand %p4767_p12, %p4764_p11 }
  0x8e   : > { %4772 = shalt.err (!%p4769_p13)
}
  0x8f   : > { %s4773_s26 = scalar_lea.vmem %s340_s20, 16  ;;  %s4780_s13 = scalar_lea.vmem %s340_s20, 32 }
  0x90   : > { %p4774_p0 = scmp.ne.s32.totalorder %s340_s20, %s4773_s26  ;;  %p4781_p7 = scmp.lt.s32.totalorder %s340_s20, %s340_s20 }
  0x91   : > { %p4782_p9 = scmp.lt.s32.totalorder %s4780_s13, %s4773_s26 }
  0x92   : > { %p4776_p2 = pnand %p4774_p0, %p5053_p8 }
  0x93   : > { %p4783_p4 = por %p4782_p9, %p4781_p7 }
  0x94   : > { %p4777_p5 = pneg %p4776_p2 }
  0x96   : > { %p4784_p10 = pnand %p4783_p4, %p4777_p5 }
  0x98   : > { %4787 = shalt.err (!%p4784_p10)
}
  0x99   : > { %4064 = dma.hbm_to_vmem [thread:$0]  (!%p5037_p6), %s5531_s7, 16, %s340_s20, [#allocation13]  }
  0x9a   : > { %s3537_s27 = sadd.s32 4294967294, %s4928_s12   ;;  %s5178_s19 = sadd.s32 1, %s4928_s12  }
  0x9b   : > { %s36_s24 = ssub.s32 %s4928_s12, %s5178_s19  ;;  %s39_s17 = sadd.s32 1, %s4924_s11 }
  0x9c   : > { %p37_p8 = scmp.eq.s32.totalorder %s36_s24, 0  ;;  %p46_p1 = scmp.ne.s32.totalorder %s4924_s11, %s4920_s10 }
  0x9d   : > { %p47_p3 = scmp.eq.s32.totalorder %s4928_s12, 0  ;;  %p52_p11 = scmp.ne.s32.totalorder %s4920_s10, %s4916_s30 }
  0x9e   : > { %s5189_s21 = scalar_select %p37_p8, %s4924_s11, %s39_s17  }
  0x9f   : > { %p5191_p12 = por %p47_p3, %p46_p1  ;;  %p5547_p13 = scmp.eq.s32.totalorder %s5021_s15, 0 }
  0xa0   : > { %p223_p0 = scmp.eq.s32.totalorder %s5021_s15, 1  ;;  %p229_p2 = scmp.eq.s32.totalorder %s3537_s27, 1 }
  0xa1   : > { %p5197_p6 = por %p5547_p13, %p52_p11  ;;  %p4082_p5 = scmp.lt.s32.totalorder %s4928_s12, 2 }
  0xa2   : > { %s350_s22 = sand.u32 1, %s4924_s11   ;;  %p5204_p7 = por %p223_p0, %p46_p1 }
  0xa3   : > { %p5208_p9 = por %p229_p2, %p52_p11  ;;  %s3546_s25 = sshll.u32 %s350_s22, 4 }
  0xa4   : > { %s5549_s1 = scalar_select %p5204_p7, 1, 0 }
  0xa5   : > { %s5550_s9 = scalar_select %p5208_p9, 1, 0 }
  0xa6   : > { %s3922_s28 = sshll.u32 %s4928_s12, 8  ;;  %s354_s14 = scalar_lea.vmem [#allocation3], %s3546_s25 }
  0xa7   : > { %s5216_s13 = scalar_lea.hbm %s5524_s0, %s3922_s28  ;;  %s361_s23 = sshll.u32 %s354_s14, 4  ;;  %s5218_s23 = int_to_ptr.vmem [resolvable:$true] %s361_s23 }
  0xa8   : > { %p5222_p4 = pnand %p4082_p5, %p5191_p12  ;;  %s5226_s24 = scalar_lea.sflag [#allocation4], %s350_s22 }
  0xa9   : > { %s4788_s17 = scalar_lea.hbm %s5216_s13, 256  ;;  %s4793_s18 = scalar_lea.hbm %s5524_s0, 512 }
  0xaa   : > { %p4789_p10 = scmp.ne.s32.totalorder %s5216_s13, %s4788_s17  ;;  %p4790_p8 = pneg %p5222_p4 }
  0xab   : > { %p4794_p11 = scmp.lt.u32.totalorder %s5216_s13, %s5524_s0  ;;  %p4795_p12 = scmp.lt.u32.totalorder %s4793_s18, %s4788_s17 }
  0xac   : > { %p4791_p1 = pnand %p4790_p8, %p4789_p10  ;;  %p4797_p0 = scmp.lt.u32.totalorder %s4788_s17, %s5216_s13 }
  0xad   : > { %p4796_p13 = por %p4795_p12, %p4794_p11 }
  0xae   : > { %p4792_p3 = pneg %p4791_p1 }
  0xaf   : > { %p4798_p2 = por %p4797_p0, %p4796_p13 }
  0xb1   : > { %p4799_p5 = pnand %p4798_p2, %p4792_p3 }
  0xb3   : > { %4802 = shalt.err (!%p4799_p5)
}
  0xb4   : > { %s4803_s22 = scalar_lea.vmem %s5218_s23, 256  ;;  %s4940_s14 = smov [#allocation3]  }
  0xb5   : > { %p4804_p10 = scmp.ne.s32.totalorder %s5218_s23, %s4803_s22  ;;  %s4808_s25 = sshll.u32 %s4940_s14, 4  ;;  %s4809_s25 = int_to_ptr.vmem [resolvable:$false] %s4808_s25 }
  0xb6   : > { %s4810_s28 = scalar_lea.vmem %s4809_s25, 512  ;;  %p4811_p7 = scmp.lt.s32.totalorder %s5218_s23, %s4809_s25 }
  0xb7   : > { %p4806_p1 = pnand %p4804_p10, %p4790_p8  ;;  %p4812_p11 = scmp.lt.s32.totalorder %s4810_s28, %s4803_s22 }
  0xb9   : > { %p4807_p9 = pneg %p4806_p1  ;;  %p4813_p12 = por %p4812_p11, %p4811_p7 }
  0xbb   : > { %p4814_p13 = pnand %p4813_p12, %p4807_p9 }
  0xbd   : > { %4817 = shalt.err (!%p4814_p13)
}
  0xbe   : > { %s4941_s17 = smov 128   ;;  %s4942_s18 = smov 8  }
  0xbf   : > { %4068 = dma.hbm_to_vmem [thread:$0]  (!%p5222_p4), %s5216_s13, 256, %s5218_s23, %s5226_s24, %s4941_s17, %s4941_s17, %s4942_s18  }
  0xc0   : > { %p5552_p8 = scmp.ne.s32.totalorder %s5541_s16, 0 }
  0xc1   : > { %s5257_s29 = sand.u32 (!%p5552_p8), 1, %s4920_s10  }
  0xc2   : > { %373 = sbr.rel (%p5552_p8) target bundleno = 1199 (0x4af), region = 52  ;;  %s3550_s26 = sshll.u32 (!%p5552_p8), %s5257_s29, 4 }
  0xc3   : > { %s376_s22 = scalar_lea.sflag (!%p5552_p8), [#allocation4], %s5257_s29  ;;  %s5263_s14 = scalar_lea.vmem (!%p5552_p8), [#allocation3], %s3550_s26 }
  0xc9   : > { %4891 = dma.done.wait (%p5197_p6), %s376_s22, 256  }
  0xca   : > { %4893 = vsyncadd (%p5197_p6), %s376_s22, 4294967040  ;;  %p5553_p7 = scmp.eq.s32.totalorder %s5021_s15, 0 }
  0xcc   : > { %4895 = dma.done.wait (%p5553_p7), [#allocation7], 1552   ;;  %p5554_p9 = pmov %p5553_p7 }
  0xcd   : > { %p5555_p4 = pmov %p5553_p7 }
  0xce   : > { %4897 = vsyncadd (%p5554_p9), [#allocation7], 4294965744 }
  0xcf   : > { %4899 = dma.done.wait (%p5555_p4), [#allocation10], 36928   ;;  %p5556_p3 = pmov %p5555_p4 }
  0xd1   : > { %4901 = vsyncadd (%p5556_p3), [#allocation10], 4294930368  ;;  %p5557_p0 = pmov %p5556_p3 }
  0xd3   : > { %4903 = dma.done.wait (%p5557_p0), [#allocation13], 4112   ;;  %p5558_p2 = pmov %p5557_p0 }
  0xd4   : > { %v4943_v0 = vmov 0   ;;  %v4141_v1 = vld [vmem:[#allocation6] sm:$0xff]   ;;  %v4142_v2 = vld [vmem:[#allocation6 + $0x8] sm:$0xff]   ;;  %v4143_v3 = vld [vmem:[#allocation6 + $0x10] sm:$0xff]   ;;  %vm558_vm0 = vcmask 523264   ;;  %s3925_s27 = sshll.u32 %s5021_s15, 7 }
  0xd5   : > { %4905 = vsyncadd (%p5558_p2), [#allocation13], 4294963184  ;;  %562 = vmatprep.subr.bf16.mxu0 %v4943_v0  ;;  %4139 = vset.pattern.permute.xlu0 %v4943_v0  ;;  %v4144_v4 = vld [vmem:[#allocation6 + $0x18] sm:$0xff]   ;;  %v3577_v6 = vld [vmem:[%s5527_s3 + $0x10] sm:$0xff]  ;;  %s5443_s28 = scalar_lea.hbm %s5532_s8, %s3925_s27  ;;  %s3341_s18 = scalar_lea.sflag [#allocation5], %s5257_s29 }
  0xd6   : > { %4140 = vset.pattern.permute.xlu1 %v4943_v0  ;;  %563 = vmatpush1.bf16.msra.mxu0 %v4141_v1  ;;  %v4155_v5 = vld [vmem:[%s5263_s14 + $0x4] ss:$8 sps:$4 sm:$0xff]   ;;  %v4153_v46 = vld [vmem:[%s5263_s14] ss:$8 sps:$4 sm:$0xff]   ;;  %s3557_s14 = sshll.u32 %s5257_s29, 3  ;;  %p5559_p5 = scmp.ne.s32.totalorder %s5549_s1, 0 }
  0xd7   : > { %564 = vmatprep.subr.bf16.mxu0 %v4943_v0  ;;  %v620_v7 = vld [vmem:[%s5527_s3] sm:$0xff]  ;;  %646 = vperm.xlu0 %4139, %v3577_v6   ;;  %v3578_v9 = vld [vmem:[%s5527_s3 + $0x18] sm:$0xff]  ;;  %v621_v10 = vld [vmem:[%s5527_s3 + $0x8] sm:$0xff]  ;;  %s5388_s23 = scalar_lea.vmem [#allocation15], %s3557_s14  ;;  %s4944_s16 = smov [#allocation15]  }
  0xd8   : > { %v4145_v8 = vld [vmem:[#allocation6 + $0x20] sm:$0xff]   ;;  %3574 = vmatprep.mubr.msk.bf16.mxu0 %vm558_vm0, %v4155_v5  ;;  %624 = vperm.xlu1 %4140, %v620_v7   ;;  %v4146_v11 = vld [vmem:[#allocation6 + $0x28] sm:$0xff]   ;;  %v3581_v12 = vld [vmem:[%s5527_s3 + $0x30] sm:$0xff]  ;;  %s3359_s17 = sshll.u32 %s5388_s23, 4  ;;  %s4822_s20 = sshll.u32 %s4944_s16, 4  ;;  %s5446_s17 = int_to_ptr.vmem [resolvable:$true] %s3359_s17  ;;  %s4823_s20 = int_to_ptr.vmem [resolvable:$false] %s4822_s20 }
  0xd9   : > { %v4156_v13 = vld [vmem:[#allocation9 + $0x4] ss:$16 sps:$4 sm:$0xff]   ;;  %v4161_v16 = vld [vmem:[#allocation9] ss:$16 sps:$4 sm:$0xff]   ;;  %v4160_v44 = vld [vmem:[#allocation9 + $0xc] ss:$16 sps:$4 sm:$0xff]   ;;  %p4825_p11 = scmp.lt.s32.totalorder %s5446_s17, %s4823_s20 }
  0xda   : > { %565 = vmatpush1.bf16.msra.mxu0 %v4142_v2  ;;  %v4147_v14 = vld [vmem:[#allocation6 + $0x30] sm:$0xff]   ;;  %v3582_v15 = vld [vmem:[%s5527_s3 + $0x38] sm:$0xff]  ;;  %v3579_v18 = vld [vmem:[%s5527_s3 + $0x20] sm:$0xff]  ;;  %2551 = vmatprep.subr.bf16.mxu1 %v4156_v13  ;;  %s4818_s22 = scalar_lea.vmem %s5446_s17, 128  ;;  %s4824_s13 = scalar_lea.vmem %s4823_s20, 256 }
  0xdb   : > { %566 = vmatprep.subr.bf16.mxu0 %v4943_v0  ;;  %651 = vperm.xlu0 %4139, %v3578_v9   ;;  %v4162_v17 = vld [vmem:[#allocation9 + $0x24] ss:$16 sps:$4 sm:$0xff]   ;;  %v4167_v20 = vld [vmem:[#allocation9 + $0x20] ss:$16 sps:$4 sm:$0xff]   ;;  %v4158_v49 = vld [vmem:[#allocation9 + $0x8] ss:$16 sps:$4 sm:$0xff]   ;;  %p4819_p6 = scmp.ne.s32.totalorder %s5446_s17, %s4818_s22  ;;  %p4826_p12 = scmp.lt.s32.totalorder %s4824_s13, %s4818_s22 }
  0xdc   : > { %629 = vperm.xlu1 %4140, %v621_v10   ;;  %v3580_v19 = vld [vmem:[%s5527_s3 + $0x28] sm:$0xff]  ;;  %2552 = vmatpush1.bf16.msra.mxu1 %v4161_v16  ;;  %v4148_v22 = vld [vmem:[#allocation6 + $0x38] sm:$0xff]   ;;  %v3585_v23 = vld [vmem:[%s5527_s3 + $0x50] sm:$0xff] }
  0xdd   : > { %2553 = vmatprep.subr.bf16.mxu1 %v4162_v17  ;;  %v4168_v21 = vld [vmem:[#allocation9 + $0x44] ss:$16 sps:$4 sm:$0xff]   ;;  %v4173_v24 = vld [vmem:[#allocation9 + $0x40] ss:$16 sps:$4 sm:$0xff]   ;;  %v4166_v50 = vld [vmem:[#allocation9 + $0x2c] ss:$16 sps:$4 sm:$0xff]   ;;  %p4820_p10 = pnand %p4819_p6, %p5559_p5  ;;  %p4827_p13 = por %p4826_p12, %p4825_p11 }
  0xde   : > { %567 = vmatpush1.bf16.msra.mxu0 %v4143_v3  ;;  %v3586_v25 = vld [vmem:[%s5527_s3 + $0x58] sm:$0xff]  ;;  %v4149_v27 = vld [vmem:[#allocation6 + $0x40] sm:$0xff]   ;;  %v3584_v29 = vld [vmem:[%s5527_s3 + $0x48] sm:$0xff] }
  0xdf   : > { %568 = vmatprep.subr.bf16.mxu0 %v4943_v0  ;;  %690 = vperm.xlu0 %4139, %v3581_v12   ;;  %v4174_v26 = vld [vmem:[#allocation9 + $0x64] ss:$16 sps:$4 sm:$0xff]   ;;  %v4179_v30 = vld [vmem:[#allocation9 + $0x60] ss:$16 sps:$4 sm:$0xff]   ;;  %v4164_v53 = vld [vmem:[#allocation9 + $0x28] ss:$16 sps:$4 sm:$0xff]   ;;  %p4821_p1 = pneg %p4820_p10 }
  0xe0   : > { %695 = vperm.xlu1 %4140, %v3582_v15   ;;  %2554 = vmatpush1.bf16.msra.mxu1 %v4167_v20  ;;  %v3583_v28 = vld [vmem:[%s5527_s3 + $0x40] sm:$0xff]  ;;  %v4150_v32 = vld [vmem:[#allocation6 + $0x48] sm:$0xff]   ;;  %v3589_v33 = vld [vmem:[%s5527_s3 + $0x70] sm:$0xff] }
  0xe1   : > { %2555 = vmatprep.subr.bf16.mxu1 %v4168_v21  ;;  %v4180_v31 = vld [vmem:[#allocation9 + $0x84] ss:$16 sps:$4 sm:$0xff]   ;;  %v4185_v34 = vld [vmem:[#allocation9 + $0x80] ss:$16 sps:$4 sm:$0xff]   ;;  %v4172_v54 = vld [vmem:[#allocation9 + $0x4c] ss:$16 sps:$4 sm:$0xff]   ;;  %p4828_p8 = pnand %p4827_p13, %p4821_p1 }
  0xe2   : > { %569 = vmatpush1.bf16.msra.mxu0 %v4144_v4  ;;  %v3590_v35 = vld [vmem:[%s5527_s3 + $0x78] sm:$0xff]  ;;  %v4151_v37 = vld [vmem:[#allocation6 + $0x50] sm:$0xff]   ;;  %v3587_v38 = vld [vmem:[%s5527_s3 + $0x60] sm:$0xff] }
  0xe3   : > { %570 = vmatprep.subr.bf16.mxu0 %v4943_v0  ;;  %668 = vperm.xlu0 %4139, %v3579_v18   ;;  %v4186_v36 = vld [vmem:[#allocation9 + $0xa4] ss:$16 sps:$4 sm:$0xff]   ;;  %v4191_v40 = vld [vmem:[#allocation9 + $0xa0] ss:$16 sps:$4 sm:$0xff]   ;;  %v4170_v56 = vld [vmem:[#allocation9 + $0x48] ss:$16 sps:$4 sm:$0xff]  }
  0xe4   : > { %673 = vperm.xlu1 %4140, %v3580_v19   ;;  %2556 = vmatpush1.bf16.msra.mxu1 %v4173_v24  ;;  %v3588_v39 = vld [vmem:[%s5527_s3 + $0x68] sm:$0xff]  ;;  %v4152_v42 = vld [vmem:[#allocation6 + $0x58] sm:$0xff]   ;;  %v3591_v43 = vld [vmem:[%s5527_s3 + $0x80] sm:$0xff] }
  0xe5   : > { %2557 = vmatprep.subr.bf16.mxu1 %v4174_v26  ;;  %v4192_v41 = vld [vmem:[#allocation9 + $0xc4] ss:$16 sps:$4 sm:$0xff]   ;;  %v4197_v45 = vld [vmem:[#allocation9 + $0xc0] ss:$16 sps:$4 sm:$0xff]   ;;  %v4178_v57 = vld [vmem:[#allocation9 + $0x6c] ss:$16 sps:$4 sm:$0xff]  }
  0xe6   : > { %571 = vmatpush1.bf16.msra.mxu0 %v4145_v8  ;;  %v3592_v47 = vld [vmem:[%s5527_s3 + $0x88] sm:$0xff]  ;;  %v4203_v51 = vld [vmem:[#allocation9 + $0xe0] ss:$16 sps:$4 sm:$0xff]  }
  0xe7   : > { %572 = vmatprep.subr.bf16.mxu0 %v4943_v0  ;;  %729 = vperm.xlu0 %4139, %v3585_v23   ;;  %v4198_v48 = vld [vmem:[#allocation9 + $0xe4] ss:$16 sps:$4 sm:$0xff]   ;;  %v4209_v55 = vld [vmem:[#allocation9 + $0x100] ss:$16 sps:$4 sm:$0xff]   ;;  %v4176_v61 = vld [vmem:[#allocation9 + $0x68] ss:$16 sps:$4 sm:$0xff]  }
  0xe8   : > { %734 = vperm.xlu1 %4140, %v3586_v25   ;;  %2558 = vmatpush1.bf16.msra.mxu1 %v4179_v30  ;;  %v4204_v52 = vld [vmem:[#allocation9 + $0x104] ss:$16 sps:$4 sm:$0xff]   ;;  %v4215_v59 = vld [vmem:[#allocation9 + $0x120] ss:$16 sps:$4 sm:$0xff]   ;;  %v4184_v62 = vld [vmem:[#allocation9 + $0x8c] ss:$16 sps:$4 sm:$0xff]  }
  0xe9   : > { %2559 = vmatprep.subr.bf16.mxu1 %v4180_v31  ;;  %v4210_v58 = vld [vmem:[#allocation9 + $0x124] ss:$16 sps:$4 sm:$0xff]   ;;  %v4221_v63 = vld [vmem:[#allocation9 + $0x140] ss:$16 sps:$4 sm:$0xff]   ;;  %v4182_v2 = vld [vmem:[#allocation9 + $0x88] ss:$16 sps:$4 sm:$0xff]  }
  0xea   : > { %573 = vmatpush1.bf16.msra.mxu0 %v4146_v11  ;;  %v4216_v60 = vld [vmem:[#allocation9 + $0x144] ss:$16 sps:$4 sm:$0xff]   ;;  %v4190_v3 = vld [vmem:[#allocation9 + $0xac] ss:$16 sps:$4 sm:$0xff]   ;;  %v4227_v4 = vld [vmem:[#allocation9 + $0x160] ss:$16 sps:$4 sm:$0xff]  }
  0xeb   : > { %574 = vmatprep.subr.bf16.mxu0 %v4943_v0  ;;  %707 = vperm.xlu0 %4139, %v3583_v28   ;;  %v4222_v1 = vld [vmem:[#allocation9 + $0x164] ss:$16 sps:$4 sm:$0xff]   ;;  %v4188_v6 = vld [vmem:[#allocation9 + $0xa8] ss:$16 sps:$4 sm:$0xff]   ;;  %v4196_v7 = vld [vmem:[#allocation9 + $0xcc] ss:$16 sps:$4 sm:$0xff]  }
  0xec   : > { %712 = vperm.xlu1 %4140, %v3584_v29   ;;  %2560 = vmatpush1.bf16.msra.mxu1 %v4185_v34  ;;  %v4228_v5 = vld [vmem:[#allocation9 + $0x184] ss:$16 sps:$4 sm:$0xff]   ;;  %v4233_v8 = vld [vmem:[#allocation9 + $0x180] ss:$16 sps:$4 sm:$0xff]   ;;  %v4194_v10 = vld [vmem:[#allocation9 + $0xc8] ss:$16 sps:$4 sm:$0xff]  }
  0xed   : > { %2561 = vmatprep.subr.bf16.mxu1 %v4186_v36  ;;  %v4234_v9 = vld [vmem:[#allocation9 + $0x1a4] ss:$16 sps:$4 sm:$0xff]   ;;  %v4202_v11 = vld [vmem:[#allocation9 + $0xec] ss:$16 sps:$4 sm:$0xff]   ;;  %v4200_v12 = vld [vmem:[#allocation9 + $0xe8] ss:$16 sps:$4 sm:$0xff]  }
  0xee   : > { %575 = vmatpush1.bf16.msra.mxu0 %v4147_v14  ;;  %v4208_v13 = vld [vmem:[#allocation9 + $0x10c] ss:$16 sps:$4 sm:$0xff]   ;;  %v4206_v14 = vld [vmem:[#allocation9 + $0x108] ss:$16 sps:$4 sm:$0xff]   ;;  %v4239_v25 = vld [vmem:[#allocation9 + $0x1a0] ss:$16 sps:$4 sm:$0xff]  }
  0xef   : > { %576 = vmatprep.subr.bf16.mxu0 %v4943_v0  ;;  %763 = vperm.xlu0 %4139, %v3589_v33   ;;  %v4214_v15 = vld [vmem:[#allocation9 + $0x12c] ss:$16 sps:$4 sm:$0xff]   ;;  %v4212_v16 = vld [vmem:[#allocation9 + $0x128] ss:$16 sps:$4 sm:$0xff]   ;;  %v4240_v26 = vld [vmem:[#allocation9 + $0x1c4] ss:$16 sps:$4 sm:$0xff]  }
  0xf0   : > { %768 = vperm.xlu1 %4140, %v3590_v35   ;;  %2562 = vmatpush1.bf16.msra.mxu1 %v4191_v40  ;;  %v4220_v17 = vld [vmem:[#allocation9 + $0x14c] ss:$16 sps:$4 sm:$0xff]   ;;  %v4218_v18 = vld [vmem:[#allocation9 + $0x148] ss:$16 sps:$4 sm:$0xff]   ;;  %v4245_v29 = vld [vmem:[#allocation9 + $0x1c0] ss:$16 sps:$4 sm:$0xff]  }
  0xf1   : > { %2563 = vmatprep.subr.bf16.mxu1 %v4192_v41  ;;  %v4226_v19 = vld [vmem:[#allocation9 + $0x16c] ss:$16 sps:$4 sm:$0xff]   ;;  %v4224_v20 = vld [vmem:[#allocation9 + $0x168] ss:$16 sps:$4 sm:$0xff]   ;;  %v4246_v30 = vld [vmem:[#allocation9 + $0x1e4] ss:$16 sps:$4 sm:$0xff]  }
  0xf2   : > { %577 = vmatpush1.bf16.msra.mxu0 %v4148_v22  ;;  %v4232_v21 = vld [vmem:[#allocation9 + $0x18c] ss:$16 sps:$4 sm:$0xff]   ;;  %v4230_v22 = vld [vmem:[#allocation9 + $0x188] ss:$16 sps:$4 sm:$0xff]   ;;  %v4251_v33 = vld [vmem:[#allocation9 + $0x1e0] ss:$16 sps:$4 sm:$0xff]  }
  0xf3   : > { %578 = vmatprep.subr.bf16.mxu0 %v4943_v0  ;;  %746 = vperm.xlu0 %4139, %v3587_v38   ;;  %v4238_v23 = vld [vmem:[#allocation9 + $0x1ac] ss:$16 sps:$4 sm:$0xff]   ;;  %v4236_v24 = vld [vmem:[#allocation9 + $0x1a8] ss:$16 sps:$4 sm:$0xff]   ;;  %v4254_v34 = vld [vmem:[#allocation9 + $0x204] ss:$16 sps:$4 sm:$0xff]  }
  0xf4   : > { %751 = vperm.xlu1 %4140, %v3588_v39   ;;  %2564 = vmatpush1.bf16.msra.mxu1 %v4197_v45  ;;  %v4242_v28 = vld [vmem:[#allocation9 + $0x1c8] ss:$16 sps:$4 sm:$0xff]   ;;  %v4250_v31 = vld [vmem:[#allocation9 + $0x1ec] ss:$16 sps:$4 sm:$0xff]  }
  0xf5   : > { %2565 = vmatprep.subr.bf16.mxu1 %v4198_v48  ;;  %v4257_v35 = vld [vmem:[#allocation9 + $0x20c] ss:$16 sps:$4 sm:$0xff]  }
  0xf6   : > { %579 = vmatpush1.bf16.msra.mxu0 %v4149_v27  ;;  %v4244_v27 = vld [vmem:[#allocation9 + $0x1cc] ss:$16 sps:$4 sm:$0xff]  }
  0xf7   : > { %580 = vmatprep.subr.bf16.mxu0 %v4943_v0  ;;  %780 = vperm.xlu0 %4139, %v3591_v43  }
  0xf8   : > { %785 = vperm.xlu1 %4140, %v3592_v47   ;;  %2566 = vmatpush1.bf16.msra.mxu1 %v4203_v51  ;;  %v3559_v51 = vld [vmem:[#allocation8] ss:$0 sm:$0xff] }
  0xf9   : > { %2567 = vmatprep.subr.bf16.mxu1 %v4204_v52 }
  0xfa   : > { %581 = vmatpush1.bf16.msra.mxu0 %v4150_v32  ;;  %v4248_v32 = vld [vmem:[#allocation9 + $0x1e8] ss:$16 sps:$4 sm:$0xff]  }
  0xfb   : > { %582 = vmatprep.subr.bf16.mxu0 %v4943_v0 }
  0xfc   : > { %2568 = vmatpush1.bf16.msra.mxu1 %v4209_v55 }
  0xfd   : > { %2569 = vmatprep.subr.bf16.mxu1 %v4210_v58 }
  0xfe   : > { %583 = vmatpush1.bf16.msra.mxu0 %v4151_v37 }
  0xff   : > { %584 = vmatprep.subr.bf16.mxu0 %v4943_v0 }
 0x100   : > { %2570 = vmatpush1.bf16.msra.mxu1 %v4215_v59 }
 0x101   : > { %2571 = vmatprep.subr.bf16.mxu1 %v4216_v60 }
 0x102   : > { %585 = vmatpush1.bf16.msra.mxu0 %v4152_v42 }
 0x103   : > { %2766 = vmatprep.subr.bf16.mxu0 %v4160_v44 }
 0x104   : > { %2572 = vmatpush1.bf16.msra.mxu1 %v4221_v63 }
 0x105   : > { %595 = vmatmul.mubr.bf16.vlgmr.msra.gmra.mrb[0].mxu0 %v4153_v46  ;;  %2573 = vmatprep.subr.bf16.mxu1 %v4222_v1 }
 0x106   : > { %2767 = vmatpush1.bf16.msra.mxu0 %v4158_v49  ;;  %v615_v49 = vlaneseq }
 0x107   : > { %2768 = vmatprep.subr.bf16.mxu0 %v4166_v50 }
 0x108   : > { %2574 = vmatpush1.bf16.msra.mxu1 %v4227_v4  ;;  %v5363_v52 = vshrl.u32 %v615_v49, 7 }
 0x109   : > { %2575 = vmatprep.subr.bf16.mxu1 %v4228_v5 }
 0x10a   : > { %2769 = vmatpush1.bf16.msra.mxu0 %v4164_v53  ;;  %vm660_vm1 = vcmp.lt.s32.totalorder %v5363_v52, 3  ;;  %vm638_vm2 = vcmp.lt.s32.totalorder %v5363_v52, 4  ;;  %vm617_vm3 = vcmp.lt.s32.totalorder %v5363_v52, 5  ;;  %vm682_vm4 = vcmp.lt.s32.totalorder %v5363_v52, 1 }
 0x10b   : > { %2770 = vmatprep.subr.bf16.mxu0 %v4172_v54  ;;  %vm721_vm5 = vcmp.lt.s32.totalorder %v5363_v52, 7 }
 0x10c   : > { %2576 = vmatpush1.bf16.msra.mxu1 %v4233_v8 }
 0x10d   : > { %2577 = vmatprep.subr.bf16.mxu1 %v4234_v9 }
 0x10e   : > { %2771 = vmatpush1.bf16.msra.mxu0 %v4170_v56 }
 0x10f   : > { %2772 = vmatprep.subr.bf16.mxu0 %v4178_v57 }
 0x110   : > { %2578 = vmatpush1.bf16.msra.mxu1 %v4239_v25 }
 0x111   : > { %2579 = vmatprep.subr.bf16.mxu1 %v4240_v26 }
 0x112   : > { %2773 = vmatpush1.bf16.msra.mxu0 %v4176_v61 }
 0x113   : > { %2774 = vmatprep.subr.bf16.mxu0 %v4184_v62 }
 0x114   : > { %2580 = vmatpush1.bf16.msra.mxu1 %v4245_v29 }
 0x115   : > { %2581 = vmatprep.subr.bf16.mxu1 %v4246_v30 }
 0x116   : > { %2775 = vmatpush1.bf16.msra.mxu0 %v4182_v2 }
 0x117   : > { %2776 = vmatprep.subr.bf16.mxu0 %v4190_v3 }
 0x118   : > { %2582 = vmatpush1.bf16.msra.mxu1 %v4251_v33  ;;  %v4252_v33 = vld [vmem:[#allocation9 + $0x200] ss:$16 sps:$4 sm:$0xff]  }
 0x119   : > { %2594 = vmatprep.subr.bf16.mxu1 %v4254_v34  ;;  %v4255_v34 = vld [vmem:[#allocation9 + $0x208] ss:$16 sps:$4 sm:$0xff]  }
 0x11a   : > { %2777 = vmatpush1.bf16.msra.mxu0 %v4188_v6 }
 0x11b   : > { %2778 = vmatprep.subr.bf16.mxu0 %v4196_v7 }
 0x11e   : > { %2779 = vmatpush1.bf16.msra.mxu0 %v4194_v10 }
 0x11f   : > { %2780 = vmatprep.subr.bf16.mxu0 %v4202_v11 }
 0x122   : > { %2781 = vmatpush1.bf16.msra.mxu0 %v4200_v12 }
 0x123   : > { %2782 = vmatprep.subr.bf16.mxu0 %v4208_v13 }
 0x126   : > { %2783 = vmatpush1.bf16.msra.mxu0 %v4206_v14 }
 0x127   : > { %2784 = vmatprep.subr.bf16.mxu0 %v4214_v15 }
 0x12a   : > { %2785 = vmatpush1.bf16.msra.mxu0 %v4212_v16 }
 0x12b   : > { %2786 = vmatprep.subr.bf16.mxu0 %v4220_v17 }
 0x12e   : > { %2787 = vmatpush1.bf16.msra.mxu0 %v4218_v18 }
 0x12f   : > { %2788 = vmatprep.subr.bf16.mxu0 %v4226_v19 }
 0x132   : > { %2789 = vmatpush1.bf16.msra.mxu0 %v4224_v20 }
 0x133   : > { %2790 = vmatprep.subr.bf16.mxu0 %v4232_v21 }
 0x136   : > { %2791 = vmatpush1.bf16.msra.mxu0 %v4230_v22 }
 0x137   : > { %2792 = vmatprep.subr.bf16.mxu0 %v4238_v23 }
 0x13a   : > { %2793 = vmatpush1.bf16.msra.mxu0 %v4236_v24 }
 0x13b   : > { %2794 = vmatprep.subr.bf16.mxu0 %v4244_v27 }
 0x13e   : > { %2795 = vmatpush1.bf16.msra.mxu0 %v4242_v28 }
 0x13f   : > { %2796 = vmatprep.subr.bf16.mxu0 %v4250_v31 }
 0x142   : > { %2797 = vmatpush1.bf16.msra.mxu0 %v4248_v32 }
 0x143   : > { %2809 = vmatprep.subr.bf16.mxu0 %v4257_v35 }
 0x156   : > { %v647_v36 = vpop.permute.xlu0 %646 }
 0x157   : > { %v5351_v37 = vpop.permute.xlu1 %624 }
 0x15a   : > { %v652_v38 = vpop.permute.xlu0 %651 }
 0x15b   : > { %v5353_v39 = vpop.permute.xlu1 %629 }
 0x15e   : > { %v5355_v40 = vpop.permute.xlu0 %690 }
 0x15f   : > { %v5357_v41 = vpop.permute.xlu1 %695 }
 0x162   : > { %v669_v42 = vpop.permute.xlu0 %668 }
 0x163   : > { %v674_v43 = vpop.permute.xlu1 %673 }
 0x166   : > { %v5359_v44 = vpop.permute.xlu0 %729 }
 0x167   : > { %v5361_v45 = vpop.permute.xlu1 %734 }
 0x16a   : > { %v708_v46 = vpop.permute.xlu0 %707 }
 0x16b   : > { %v713_v47 = vpop.permute.xlu1 %712 }
 0x16e   : > { %v764_v48 = vpop.permute.xlu0 %763 }
 0x16f   : > { %v769_v50 = vpop.permute.xlu1 %768 }
 0x172   : > { %v747_v53 = vpop.permute.xlu0 %746 }
 0x173   : > { %v752_v55 = vpop.permute.xlu1 %751 }
 0x176   : > { %v781_v11 = vpop.permute.xlu0 %780 }
 0x177   : > { %v786_v13 = vpop.permute.xlu1 %785 }
 0x1d8   : > { %v596_v54 = vpop.f32.mrb[0].mxu0 }
 0x1d9   : > { %v5365_v56 = vadd.f32 %v3559_v51, %v596_v54  ;;  %v598_v57 = vpop.f32.mrb[1].mxu0 }
 0x1da   : > { %v599_v58 = vpop.f32.mrb[2].mxu0  ;;  %v4269_v57 = vld [vmem:[#allocation9 + $0x24c] ss:$16 sps:$4 sm:$0xff]  }
 0x1db   : > { %v600_v59 = vadd.f32 %v3559_v51, %v599_v58  ;;  %v658_v60 = vrot.slane %v5365_v56, 5  ;;  %v601_v61 = vpop.f32.mrb[3].mxu0  ;;  %v636_v62 = vrot.slane %v5365_v56, 4  ;;  %v613_v63 = vrot.slane %v5365_v56, 3  ;;  %v4264_v58 = vld [vmem:[#allocation9 + $0x240] ss:$16 sps:$4 sm:$0xff]  }
 0x1dc   : > { %v680_v1 = vrot.slane %v5365_v56, 7  ;;  %v719_v2 = vrot.slane %v5365_v56, 1  ;;  %v715_v6 = vmul.f32 %v708_v46, %v5365_v56  ;;  %v4260_v46 = vld [vmem:[#allocation9 + $0x224] ss:$16 sps:$4 sm:$0xff]   ;;  %v4270_v61 = vld [vmem:[#allocation9 + $0x260] ss:$16 sps:$4 sm:$0xff]  }
 0x1dd   : > { %v659_v3 = vrot.slane %v600_v59, 5  ;;  %v637_v4 = vrot.slane %v600_v59, 4  ;;  %v614_v5 = vrot.slane %v600_v59, 3  ;;  %v681_v7 = vrot.slane %v600_v59, 7 }
 0x1de   : > { %v720_v8 = vrot.slane %v600_v59, 1  ;;  %v716_v9 = vmul.f32 %v713_v47, %v600_v59  ;;  %v3930_v10 = vpack.c.bf16 %v600_v59, %v5365_v56  ;;  %v4263_v47 = vld [vmem:[#allocation9 + $0x22c] ss:$16 sps:$4 sm:$0xff]   ;;  %v4266_v56 = vld [vmem:[#allocation9 + $0x244] ss:$16 sps:$4 sm:$0xff]  }
 0x1df   : > { %v661_v12 = vsel %vm660_vm1, %v658_v60, %v659_v3  ;;  %v662_v14 = vsel %vm660_vm1, %v659_v3, %v658_v60  ;;  %v639_v15 = vsel %vm638_vm2, %v636_v62, %v637_v4  ;;  %v640_v16 = vsel %vm638_vm2, %v637_v4, %v636_v62  ;;  %v4267_v59 = vld [vmem:[#allocation9 + $0x248] ss:$16 sps:$4 sm:$0xff]   ;;  %v4275_v60 = vld [vmem:[#allocation9 + $0x26c] ss:$16 sps:$4 sm:$0xff]   ;;  %v4284_v4 = vld [vmem:[#allocation9 + $0x2a4] ss:$16 sps:$4 sm:$0xff]  }
 0x1e0   : > { %v677_v17 = vmul.f32 %v674_v43, %v661_v12  ;;  %v788_v18 = vmul.f32 %v781_v11, %v661_v12  ;;  %v676_v19 = vmul.f32 %v669_v42, %v662_v14  ;;  %v789_v20 = vmul.f32 %v786_v13, %v662_v14  ;;  %3931 = vst [vmem:[%s5388_s23] sm:$0xff] %v3930_v10   ;;  %v4273_v62 = vld [vmem:[#allocation9 + $0x268] ss:$16 sps:$4 sm:$0xff]   ;;  %v4288_v10 = vld [vmem:[#allocation9 + $0x2c0] ss:$16 sps:$4 sm:$0xff]   ;;  %v4296_v12 = vld [vmem:[#allocation9 + $0x2e4] ss:$16 sps:$4 sm:$0xff]  }
 0x1e1   : > { %v654_v21 = vmul.f32 %v647_v36, %v640_v16  ;;  %v655_v22 = vmul.f32 %v652_v38, %v639_v15  ;;  %v771_v23 = vmul.f32 %v764_v48, %v639_v15  ;;  %v772_v24 = vmul.f32 %v769_v50, %v640_v16  ;;  %v4279_v3 = vld [vmem:[#allocation9 + $0x288] ss:$16 sps:$4 sm:$0xff]   ;;  %v4299_v13 = vld [vmem:[#allocation9 + $0x2ec] ss:$16 sps:$4 sm:$0xff]   ;;  %v4294_v14 = vld [vmem:[#allocation9 + $0x2e0] ss:$16 sps:$4 sm:$0xff]  }
 0x1e2   : > { %v5391_v25 = vpack.c.bf16 %v677_v17, %v676_v19  ;;  %v5393_v26 = vpack.c.bf16 %v789_v20, %v788_v18  ;;  %v618_v27 = vsel %vm617_vm3, %v613_v63, %v614_v5  ;;  %v619_v28 = vsel %vm617_vm3, %v614_v5, %v613_v63  ;;  %v4278_v63 = vld [vmem:[#allocation9 + $0x284] ss:$16 sps:$4 sm:$0xff]   ;;  %v4287_v5 = vld [vmem:[#allocation9 + $0x2ac] ss:$16 sps:$4 sm:$0xff]   ;;  %v4291_v11 = vld [vmem:[#allocation9 + $0x2c8] ss:$16 sps:$4 sm:$0xff]  }
 0x1e3   : > { %v656_v29 = vpack.c.bf16 %v655_v22, %v654_v21  ;;  %v632_v30 = vmul.f32 %v5351_v37, %v619_v28  ;;  %v633_v31 = vmul.f32 %v5353_v39, %v618_v27  ;;  %v754_v32 = vmul.f32 %v747_v53, %v618_v27  ;;  %v4297_v15 = vld [vmem:[#allocation9 + $0x2e8] ss:$16 sps:$4 sm:$0xff]   ;;  %v4302_v16 = vld [vmem:[#allocation9 + $0x304] ss:$16 sps:$4 sm:$0xff]   ;;  %v4305_v17 = vld [vmem:[#allocation9 + $0x30c] ss:$16 sps:$4 sm:$0xff]  }
 0x1e4   : > { %v755_v35 = vmul.f32 %v752_v55, %v619_v28  ;;  %v683_v36 = vsel %vm682_vm4, %v680_v1, %v681_v7  ;;  %v684_v38 = vsel %vm682_vm4, %v681_v7, %v680_v1  ;;  %v722_v42 = vsel %vm721_vm5, %v719_v2, %v720_v8  ;;  %v4281_v1 = vld [vmem:[#allocation9 + $0x28c] ss:$16 sps:$4 sm:$0xff]   ;;  %v4285_v7 = vld [vmem:[#allocation9 + $0x2a8] ss:$16 sps:$4 sm:$0xff]   ;;  %v4300_v18 = vld [vmem:[#allocation9 + $0x300] ss:$16 sps:$4 sm:$0xff]  }
 0x1e5   : > { %2583 = vmatprep.mubr.bf16.mxu1 %v656_v29  ;;  %2798 = vmatprep.mubr.bf16.mxu0 %v656_v29  ;;  %v634_v43 = vpack.c.bf16 %v633_v31, %v632_v30  ;;  %v698_v37 = vmul.f32 %v5355_v40, %v684_v38  ;;  %v699_v39 = vmul.f32 %v5357_v41, %v683_v36  ;;  %v4258_v40 = vld [vmem:[#allocation9 + $0x220] ss:$16 sps:$4 sm:$0xff]   ;;  %v4261_v41 = vld [vmem:[#allocation9 + $0x228] ss:$16 sps:$4 sm:$0xff]   ;;  %v4308_v20 = vld [vmem:[#allocation9 + $0x324] ss:$16 sps:$4 sm:$0xff]  }
 0x1e6   : > { %v723_v48 = vsel %vm721_vm5, %v720_v8, %v719_v2  ;;  %v737_v49 = vmul.f32 %v5359_v44, %v722_v42  ;;  %v5412_v50 = vpack.c.bf16 %v716_v9, %v715_v6  ;;  %v5414_v51 = vpack.c.bf16 %v772_v24, %v771_v23  ;;  %v4276_v2 = vld [vmem:[#allocation9 + $0x280] ss:$16 sps:$4 sm:$0xff]   ;;  %v4290_v8 = vld [vmem:[#allocation9 + $0x2c4] ss:$16 sps:$4 sm:$0xff]   ;;  %v4293_v9 = vld [vmem:[#allocation9 + $0x2cc] ss:$16 sps:$4 sm:$0xff]  }
 0x1e7   : > { %2584 = vmatmul.mubr.bf16.vlgmr.msra.gmra.mrb[0].mxu1 %v634_v43  ;;  %2799 = vmatmul.mubr.bf16.vlgmr.msra.gmra.mrb[4].mxu0 %v634_v43  ;;  %v700_v53 = vpack.c.bf16 %v699_v39, %v698_v37  ;;  %v738_v54 = vmul.f32 %v5361_v45, %v723_v48  ;;  %v5417_v55 = vpack.c.bf16 %v755_v35, %v754_v32  ;;  %v4272_v45 = vld [vmem:[#allocation9 + $0x264] ss:$16 sps:$4 sm:$0xff]   ;;  %v4282_v6 = vld [vmem:[#allocation9 + $0x2a0] ss:$16 sps:$4 sm:$0xff]   ;;  %v4303_v19 = vld [vmem:[#allocation9 + $0x308] ss:$16 sps:$4 sm:$0xff]  }
 0x1e8   : > { %2595 = vmatpush1.bf16.msra.mxu1 %v4252_v33  ;;  %2810 = vmatpush1.bf16.msra.mxu0 %v4255_v34  ;;  %v4311_v21 = vld [vmem:[#allocation9 + $0x32c] ss:$16 sps:$4 sm:$0xff]   ;;  %v4306_v22 = vld [vmem:[#allocation9 + $0x320] ss:$16 sps:$4 sm:$0xff]   ;;  %v4309_v23 = vld [vmem:[#allocation9 + $0x328] ss:$16 sps:$4 sm:$0xff]  }
 0x1e9   : > { %2626 = vmatprep.mubr.bf16.mxu1 %v700_v53  ;;  %2841 = vmatprep.mubr.bf16.mxu0 %v700_v53  ;;  %v5419_v44 = vpack.c.bf16 %v738_v54, %v737_v49  ;;  %v4314_v24 = vld [vmem:[#allocation9 + $0x344] ss:$16 sps:$4 sm:$0xff]   ;;  %v4317_v27 = vld [vmem:[#allocation9 + $0x34c] ss:$16 sps:$4 sm:$0xff]   ;;  %v4312_v28 = vld [vmem:[#allocation9 + $0x340] ss:$16 sps:$4 sm:$0xff]  }
 0x1ea   : > { %2596 = vmatprep.subr.bf16.mxu1 %v4260_v46  ;;  %2811 = vmatprep.subr.bf16.mxu0 %v4263_v47  ;;  %v4315_v29 = vld [vmem:[#allocation9 + $0x348] ss:$16 sps:$4 sm:$0xff]   ;;  %v4320_v30 = vld [vmem:[#allocation9 + $0x364] ss:$16 sps:$4 sm:$0xff]   ;;  %v4323_v31 = vld [vmem:[#allocation9 + $0x36c] ss:$16 sps:$4 sm:$0xff]  }
 0x1eb   : > { %v4318_v32 = vld [vmem:[#allocation9 + $0x360] ss:$16 sps:$4 sm:$0xff]   ;;  %v4321_v33 = vld [vmem:[#allocation9 + $0x368] ss:$16 sps:$4 sm:$0xff]   ;;  %v4326_v34 = vld [vmem:[#allocation9 + $0x384] ss:$16 sps:$4 sm:$0xff]  }
 0x1ec   : > { %2597 = vmatpush1.bf16.msra.mxu1 %v4258_v40  ;;  %2812 = vmatpush1.bf16.msra.mxu0 %v4261_v41  ;;  %v4329_v35 = vld [vmem:[#allocation9 + $0x38c] ss:$16 sps:$4 sm:$0xff]   ;;  %v4324_v36 = vld [vmem:[#allocation9 + $0x380] ss:$16 sps:$4 sm:$0xff]   ;;  %v4327_v38 = vld [vmem:[#allocation9 + $0x388] ss:$16 sps:$4 sm:$0xff]  }
 0x1ed   : > { %2598 = vmatprep.subr.bf16.mxu1 %v4266_v56  ;;  %2813 = vmatprep.subr.bf16.mxu0 %v4269_v57  ;;  %v4332_v42 = vld [vmem:[#allocation9 + $0x3a4] ss:$16 sps:$4 sm:$0xff]   ;;  %v4335_v43 = vld [vmem:[#allocation9 + $0x3ac] ss:$16 sps:$4 sm:$0xff]   ;;  %v4330_v37 = vld [vmem:[#allocation9 + $0x3a0] ss:$16 sps:$4 sm:$0xff]  }
 0x1ee   : > { %v4333_v39 = vld [vmem:[#allocation9 + $0x3a8] ss:$16 sps:$4 sm:$0xff]   ;;  %v4338_v46 = vld [vmem:[#allocation9 + $0x3c4] ss:$16 sps:$4 sm:$0xff]   ;;  %v4341_v47 = vld [vmem:[#allocation9 + $0x3cc] ss:$16 sps:$4 sm:$0xff]  }
 0x1ef   : > { %v4336_v48 = vld [vmem:[#allocation9 + $0x3c0] ss:$16 sps:$4 sm:$0xff]   ;;  %v4339_v49 = vld [vmem:[#allocation9 + $0x3c8] ss:$16 sps:$4 sm:$0xff]   ;;  %v4344_v53 = vld [vmem:[#allocation9 + $0x3e4] ss:$16 sps:$4 sm:$0xff]  }
 0x1f0   : > { %2599 = vmatpush1.bf16.msra.mxu1 %v4264_v58  ;;  %2814 = vmatpush1.bf16.msra.mxu0 %v4267_v59  ;;  %v4347_v54 = vld [vmem:[#allocation9 + $0x3ec] ss:$16 sps:$4 sm:$0xff]   ;;  %v4342_v40 = vld [vmem:[#allocation9 + $0x3e0] ss:$16 sps:$4 sm:$0xff]   ;;  %v4345_v41 = vld [vmem:[#allocation9 + $0x3e8] ss:$16 sps:$4 sm:$0xff]  }
 0x1f1   : > { %2600 = vmatprep.subr.bf16.mxu1 %v4272_v45  ;;  %2815 = vmatprep.subr.bf16.mxu0 %v4275_v60  ;;  %v4350_v56 = vld [vmem:[#allocation9 + $0x404] ss:$16 sps:$4 sm:$0xff]   ;;  %v4353_v57 = vld [vmem:[#allocation9 + $0x40c] ss:$16 sps:$4 sm:$0xff]   ;;  %v4348_v58 = vld [vmem:[#allocation9 + $0x400] ss:$16 sps:$4 sm:$0xff]  }
 0x1f2   : > { %v4351_v59 = vld [vmem:[#allocation9 + $0x408] ss:$16 sps:$4 sm:$0xff]   ;;  %v4356_v45 = vld [vmem:[#allocation9 + $0x424] ss:$16 sps:$4 sm:$0xff]   ;;  %v4359_v60 = vld [vmem:[#allocation9 + $0x42c] ss:$16 sps:$4 sm:$0xff]  }
 0x1f4   : > { %2601 = vmatpush1.bf16.msra.mxu1 %v4270_v61  ;;  %2816 = vmatpush1.bf16.msra.mxu0 %v4273_v62  ;;  %v4354_v61 = vld [vmem:[#allocation9 + $0x420] ss:$16 sps:$4 sm:$0xff]   ;;  %v4357_v62 = vld [vmem:[#allocation9 + $0x428] ss:$16 sps:$4 sm:$0xff]  }
 0x1f5   : > { %2602 = vmatprep.subr.bf16.mxu1 %v4278_v63  ;;  %2817 = vmatprep.subr.bf16.mxu0 %v4281_v1  ;;  %v4362_v63 = vld [vmem:[#allocation9 + $0x444] ss:$16 sps:$4 sm:$0xff]   ;;  %v4365_v1 = vld [vmem:[#allocation9 + $0x44c] ss:$16 sps:$4 sm:$0xff]  }
 0x1f8   : > { %2603 = vmatpush1.bf16.msra.mxu1 %v4276_v2  ;;  %2818 = vmatpush1.bf16.msra.mxu0 %v4279_v3  ;;  %v4360_v2 = vld [vmem:[#allocation9 + $0x440] ss:$16 sps:$4 sm:$0xff]   ;;  %v4363_v3 = vld [vmem:[#allocation9 + $0x448] ss:$16 sps:$4 sm:$0xff]  }
 0x1f9   : > { %2604 = vmatprep.subr.bf16.mxu1 %v4284_v4  ;;  %2819 = vmatprep.subr.bf16.mxu0 %v4287_v5  ;;  %v4368_v4 = vld [vmem:[#allocation9 + $0x464] ss:$16 sps:$4 sm:$0xff]   ;;  %v4366_v5 = vld [vmem:[#allocation9 + $0x460] ss:$16 sps:$4 sm:$0xff]  }
 0x1fc   : > { %2605 = vmatpush1.bf16.msra.mxu1 %v4282_v6  ;;  %2820 = vmatpush1.bf16.msra.mxu0 %v4285_v7  ;;  %v4369_v6 = vld [vmem:[#allocation9 + $0x468] ss:$16 sps:$4 sm:$0xff]   ;;  %v4374_v7 = vld [vmem:[#allocation9 + $0x484] ss:$16 sps:$4 sm:$0xff]  }
 0x1fd   : > { %2606 = vmatprep.subr.bf16.mxu1 %v4290_v8  ;;  %2821 = vmatprep.subr.bf16.mxu0 %v4293_v9  ;;  %v4372_v8 = vld [vmem:[#allocation9 + $0x480] ss:$16 sps:$4 sm:$0xff]   ;;  %v4375_v9 = vld [vmem:[#allocation9 + $0x488] ss:$16 sps:$4 sm:$0xff]  }
 0x200   : > { %2607 = vmatpush1.bf16.msra.mxu1 %v4288_v10  ;;  %2822 = vmatpush1.bf16.msra.mxu0 %v4291_v11  ;;  %v4380_v10 = vld [vmem:[#allocation9 + $0x4a4] ss:$16 sps:$4 sm:$0xff]   ;;  %v4383_v11 = vld [vmem:[#allocation9 + $0x4ac] ss:$16 sps:$4 sm:$0xff]  }
 0x201   : > { %2608 = vmatprep.subr.bf16.mxu1 %v4296_v12  ;;  %2823 = vmatprep.subr.bf16.mxu0 %v4299_v13  ;;  %v4378_v12 = vld [vmem:[#allocation9 + $0x4a0] ss:$16 sps:$4 sm:$0xff]   ;;  %v4381_v13 = vld [vmem:[#allocation9 + $0x4a8] ss:$16 sps:$4 sm:$0xff]  }
 0x204   : > { %2609 = vmatpush1.bf16.msra.mxu1 %v4294_v14  ;;  %2824 = vmatpush1.bf16.msra.mxu0 %v4297_v15  ;;  %v4386_v14 = vld [vmem:[#allocation9 + $0x4c4] ss:$16 sps:$4 sm:$0xff]   ;;  %v4389_v15 = vld [vmem:[#allocation9 + $0x4cc] ss:$16 sps:$4 sm:$0xff]  }
 0x205   : > { %2610 = vmatprep.subr.bf16.mxu1 %v4302_v16  ;;  %2825 = vmatprep.subr.bf16.mxu0 %v4305_v17  ;;  %v4384_v16 = vld [vmem:[#allocation9 + $0x4c0] ss:$16 sps:$4 sm:$0xff]   ;;  %v4387_v17 = vld [vmem:[#allocation9 + $0x4c8] ss:$16 sps:$4 sm:$0xff]  }
 0x208   : > { %2611 = vmatpush1.bf16.msra.mxu1 %v4300_v18  ;;  %2826 = vmatpush1.bf16.msra.mxu0 %v4303_v19  ;;  %v4392_v18 = vld [vmem:[#allocation9 + $0x4e4] ss:$16 sps:$4 sm:$0xff]   ;;  %v4395_v19 = vld [vmem:[#allocation9 + $0x4ec] ss:$16 sps:$4 sm:$0xff]  }
 0x209   : > { %2612 = vmatprep.subr.bf16.mxu1 %v4308_v20  ;;  %2827 = vmatprep.subr.bf16.mxu0 %v4311_v21  ;;  %v4390_v20 = vld [vmem:[#allocation9 + $0x4e0] ss:$16 sps:$4 sm:$0xff]   ;;  %v4393_v21 = vld [vmem:[#allocation9 + $0x4e8] ss:$16 sps:$4 sm:$0xff]  }
 0x20c   : > { %2613 = vmatpush1.bf16.msra.mxu1 %v4306_v22  ;;  %2828 = vmatpush1.bf16.msra.mxu0 %v4309_v23  ;;  %v4398_v22 = vld [vmem:[#allocation9 + $0x504] ss:$16 sps:$4 sm:$0xff]   ;;  %v4401_v23 = vld [vmem:[#allocation9 + $0x50c] ss:$16 sps:$4 sm:$0xff]  }
 0x20d   : > { %2614 = vmatprep.subr.bf16.mxu1 %v4314_v24  ;;  %2829 = vmatprep.subr.bf16.mxu0 %v4317_v27  ;;  %v4396_v24 = vld [vmem:[#allocation9 + $0x500] ss:$16 sps:$4 sm:$0xff]   ;;  %v4399_v27 = vld [vmem:[#allocation9 + $0x508] ss:$16 sps:$4 sm:$0xff]  }
 0x210   : > { %2615 = vmatpush1.bf16.msra.mxu1 %v4312_v28  ;;  %2830 = vmatpush1.bf16.msra.mxu0 %v4315_v29  ;;  %v4404_v28 = vld [vmem:[#allocation9 + $0x524] ss:$16 sps:$4 sm:$0xff]   ;;  %v4407_v29 = vld [vmem:[#allocation9 + $0x52c] ss:$16 sps:$4 sm:$0xff]  }
 0x211   : > { %2616 = vmatprep.subr.bf16.mxu1 %v4320_v30  ;;  %2831 = vmatprep.subr.bf16.mxu0 %v4323_v31  ;;  %v4402_v30 = vld [vmem:[#allocation9 + $0x520] ss:$16 sps:$4 sm:$0xff]   ;;  %v4405_v31 = vld [vmem:[#allocation9 + $0x528] ss:$16 sps:$4 sm:$0xff]  }
 0x214   : > { %2617 = vmatpush1.bf16.msra.mxu1 %v4318_v32  ;;  %2832 = vmatpush1.bf16.msra.mxu0 %v4321_v33  ;;  %v4410_v32 = vld [vmem:[#allocation9 + $0x544] ss:$16 sps:$4 sm:$0xff]   ;;  %v4413_v33 = vld [vmem:[#allocation9 + $0x54c] ss:$16 sps:$4 sm:$0xff]  }
 0x215   : > { %2618 = vmatprep.subr.bf16.mxu1 %v4326_v34  ;;  %2833 = vmatprep.subr.bf16.mxu0 %v4329_v35  ;;  %v4408_v34 = vld [vmem:[#allocation9 + $0x540] ss:$16 sps:$4 sm:$0xff]   ;;  %v4411_v35 = vld [vmem:[#allocation9 + $0x548] ss:$16 sps:$4 sm:$0xff]  }
 0x218   : > { %2619 = vmatpush1.bf16.msra.mxu1 %v4324_v36  ;;  %2834 = vmatpush1.bf16.msra.mxu0 %v4327_v38  ;;  %v4416_v36 = vld [vmem:[#allocation9 + $0x564] ss:$16 sps:$4 sm:$0xff]   ;;  %v4419_v38 = vld [vmem:[#allocation9 + $0x56c] ss:$16 sps:$4 sm:$0xff]  }
 0x219   : > { %2620 = vmatprep.subr.bf16.mxu1 %v4332_v42  ;;  %2835 = vmatprep.subr.bf16.mxu0 %v4335_v43  ;;  %v4414_v42 = vld [vmem:[#allocation9 + $0x560] ss:$16 sps:$4 sm:$0xff]   ;;  %v4417_v43 = vld [vmem:[#allocation9 + $0x568] ss:$16 sps:$4 sm:$0xff]  }
 0x21c   : > { %2621 = vmatpush1.bf16.msra.mxu1 %v4330_v37  ;;  %2836 = vmatpush1.bf16.msra.mxu0 %v4333_v39  ;;  %v4422_v37 = vld [vmem:[#allocation9 + $0x584] ss:$16 sps:$4 sm:$0xff]   ;;  %v4425_v39 = vld [vmem:[#allocation9 + $0x58c] ss:$16 sps:$4 sm:$0xff]  }
 0x21d   : > { %2622 = vmatprep.subr.bf16.mxu1 %v4338_v46  ;;  %2837 = vmatprep.subr.bf16.mxu0 %v4341_v47  ;;  %v4420_v46 = vld [vmem:[#allocation9 + $0x580] ss:$16 sps:$4 sm:$0xff]   ;;  %v4423_v47 = vld [vmem:[#allocation9 + $0x588] ss:$16 sps:$4 sm:$0xff]  }
 0x220   : > { %2623 = vmatpush1.bf16.msra.mxu1 %v4336_v48  ;;  %2838 = vmatpush1.bf16.msra.mxu0 %v4339_v49  ;;  %v4428_v48 = vld [vmem:[#allocation9 + $0x5a4] ss:$16 sps:$4 sm:$0xff]   ;;  %v4431_v49 = vld [vmem:[#allocation9 + $0x5ac] ss:$16 sps:$4 sm:$0xff]  }
 0x221   : > { %2624 = vmatprep.subr.bf16.mxu1 %v4344_v53  ;;  %2839 = vmatprep.subr.bf16.mxu0 %v4347_v54  ;;  %v4426_v53 = vld [vmem:[#allocation9 + $0x5a0] ss:$16 sps:$4 sm:$0xff]   ;;  %v4429_v54 = vld [vmem:[#allocation9 + $0x5a8] ss:$16 sps:$4 sm:$0xff]  }
 0x224   : > { %2625 = vmatpush1.bf16.msra.mxu1 %v4342_v40  ;;  %2840 = vmatpush1.bf16.msra.mxu0 %v4345_v41  ;;  %v4434_v40 = vld [vmem:[#allocation9 + $0x5c4] ss:$16 sps:$4 sm:$0xff]   ;;  %v4437_v41 = vld [vmem:[#allocation9 + $0x5cc] ss:$16 sps:$4 sm:$0xff]  }
 0x225   : > { %2637 = vmatprep.subr.bf16.mxu1 %v4350_v56  ;;  %2852 = vmatprep.subr.bf16.mxu0 %v4353_v57  ;;  %v4432_v56 = vld [vmem:[#allocation9 + $0x5c0] ss:$16 sps:$4 sm:$0xff]   ;;  %v4435_v57 = vld [vmem:[#allocation9 + $0x5c8] ss:$16 sps:$4 sm:$0xff]  }
 0x227   : > { %2627 = vmatmul.mubr.bf16.vlgmr.msra.gmra.mrb[0].mxu1 %v5391_v25  ;;  %2842 = vmatmul.mubr.bf16.vlgmr.msra.gmra.mrb[4].mxu0 %v5391_v25  ;;  %v4371_v25 = vld [vmem:[#allocation9 + $0x46c] ss:$16 sps:$4 sm:$0xff]  }
 0x228   : > { %2638 = vmatpush1.bf16.msra.mxu1 %v4348_v58  ;;  %2669 = vmatprep.mubr.bf16.mxu1 %v5419_v44  ;;  %v4440_v58 = vld [vmem:[#allocation9 + $0x5e4] ss:$16 sps:$4 sm:$0xff]  }
 0x229   : > { %2853 = vmatpush1.bf16.msra.mxu0 %v4351_v59  ;;  %2884 = vmatprep.mubr.bf16.mxu0 %v5419_v44  ;;  %v4377_v44 = vld [vmem:[#allocation9 + $0x48c] ss:$16 sps:$4 sm:$0xff]  }
 0x22a   : > { %2639 = vmatprep.subr.bf16.mxu1 %v4356_v45  ;;  %2854 = vmatprep.subr.bf16.mxu0 %v4359_v60  ;;  %v4443_v59 = vld [vmem:[#allocation9 + $0x5ec] ss:$16 sps:$4 sm:$0xff]   ;;  %v4438_v45 = vld [vmem:[#allocation9 + $0x5e0] ss:$16 sps:$4 sm:$0xff]   ;;  %v4441_v60 = vld [vmem:[#allocation9 + $0x5e8] ss:$16 sps:$4 sm:$0xff]  }
 0x22c   : > { %2640 = vmatpush1.bf16.msra.mxu1 %v4354_v61  ;;  %v4446_v61 = vld [vmem:[#allocation9 + $0x604] ss:$16 sps:$4 sm:$0xff]  }
 0x22d   : > { %2855 = vmatpush1.bf16.msra.mxu0 %v4357_v62  ;;  %2641 = vmatprep.subr.bf16.mxu1 %v4362_v63  ;;  %v4449_v62 = vld [vmem:[#allocation9 + $0x60c] ss:$16 sps:$4 sm:$0xff]   ;;  %v4444_v63 = vld [vmem:[#allocation9 + $0x600] ss:$16 sps:$4 sm:$0xff]  }
 0x22e   : > { %2856 = vmatprep.subr.bf16.mxu0 %v4365_v1  ;;  %v4447_v1 = vld [vmem:[#allocation9 + $0x608] ss:$16 sps:$4 sm:$0xff]  }
 0x230   : > { %2642 = vmatpush1.bf16.msra.mxu1 %v4360_v2  ;;  %v4452_v2 = vld [vmem:[#allocation9 + $0x624] ss:$16 sps:$4 sm:$0xff]  }
 0x231   : > { %2857 = vmatpush1.bf16.msra.mxu0 %v4363_v3  ;;  %2643 = vmatprep.subr.bf16.mxu1 %v4368_v4  ;;  %v4455_v3 = vld [vmem:[#allocation9 + $0x62c] ss:$16 sps:$4 sm:$0xff]   ;;  %v4450_v4 = vld [vmem:[#allocation9 + $0x620] ss:$16 sps:$4 sm:$0xff]  }
 0x232   : > { %2858 = vmatprep.subr.bf16.mxu0 %v4371_v25  ;;  %v4453_v25 = vld [vmem:[#allocation9 + $0x628] ss:$16 sps:$4 sm:$0xff]  }
 0x234   : > { %2644 = vmatpush1.bf16.msra.mxu1 %v4366_v5  ;;  %v4458_v5 = vld [vmem:[#allocation9 + $0x644] ss:$16 sps:$4 sm:$0xff]  }
 0x235   : > { %2859 = vmatpush1.bf16.msra.mxu0 %v4369_v6  ;;  %2645 = vmatprep.subr.bf16.mxu1 %v4374_v7  ;;  %v4461_v6 = vld [vmem:[#allocation9 + $0x64c] ss:$16 sps:$4 sm:$0xff]   ;;  %v4456_v7 = vld [vmem:[#allocation9 + $0x640] ss:$16 sps:$4 sm:$0xff]  }
 0x236   : > { %2860 = vmatprep.subr.bf16.mxu0 %v4377_v44  ;;  %v4459_v44 = vld [vmem:[#allocation9 + $0x648] ss:$16 sps:$4 sm:$0xff]  }
 0x238   : > { %2646 = vmatpush1.bf16.msra.mxu1 %v4372_v8  ;;  %v4464_v8 = vld [vmem:[#allocation9 + $0x664] ss:$16 sps:$4 sm:$0xff]  }
 0x239   : > { %2861 = vmatpush1.bf16.msra.mxu0 %v4375_v9  ;;  %2647 = vmatprep.subr.bf16.mxu1 %v4380_v10  ;;  %v4462_v9 = vld [vmem:[#allocation9 + $0x660] ss:$16 sps:$4 sm:$0xff]   ;;  %v4465_v10 = vld [vmem:[#allocation9 + $0x668] ss:$16 sps:$4 sm:$0xff]  }
 0x23a   : > { %2862 = vmatprep.subr.bf16.mxu0 %v4383_v11  ;;  %v4470_v11 = vld [vmem:[#allocation9 + $0x684] ss:$16 sps:$4 sm:$0xff]  }
 0x23c   : > { %2648 = vmatpush1.bf16.msra.mxu1 %v4378_v12  ;;  %v4473_v12 = vld [vmem:[#allocation9 + $0x68c] ss:$16 sps:$4 sm:$0xff]  }
 0x23d   : > { %2863 = vmatpush1.bf16.msra.mxu0 %v4381_v13  ;;  %2649 = vmatprep.subr.bf16.mxu1 %v4386_v14  ;;  %v4471_v13 = vld [vmem:[#allocation9 + $0x688] ss:$16 sps:$4 sm:$0xff]   ;;  %v4476_v14 = vld [vmem:[#allocation9 + $0x6a4] ss:$16 sps:$4 sm:$0xff]  }
 0x23e   : > { %2864 = vmatprep.subr.bf16.mxu0 %v4389_v15  ;;  %v4479_v15 = vld [vmem:[#allocation9 + $0x6ac] ss:$16 sps:$4 sm:$0xff]  }
 0x240   : > { %2650 = vmatpush1.bf16.msra.mxu1 %v4384_v16  ;;  %v4474_v16 = vld [vmem:[#allocation9 + $0x6a0] ss:$16 sps:$4 sm:$0xff]  }
 0x241   : > { %2865 = vmatpush1.bf16.msra.mxu0 %v4387_v17  ;;  %2651 = vmatprep.subr.bf16.mxu1 %v4392_v18  ;;  %v4477_v17 = vld [vmem:[#allocation9 + $0x6a8] ss:$16 sps:$4 sm:$0xff]   ;;  %v4482_v18 = vld [vmem:[#allocation9 + $0x6c4] ss:$16 sps:$4 sm:$0xff]  }
 0x242   : > { %2866 = vmatprep.subr.bf16.mxu0 %v4395_v19  ;;  %v4485_v19 = vld [vmem:[#allocation9 + $0x6cc] ss:$16 sps:$4 sm:$0xff]  }
 0x244   : > { %2652 = vmatpush1.bf16.msra.mxu1 %v4390_v20  ;;  %v4480_v20 = vld [vmem:[#allocation9 + $0x6c0] ss:$16 sps:$4 sm:$0xff]  }
 0x245   : > { %2867 = vmatpush1.bf16.msra.mxu0 %v4393_v21  ;;  %2653 = vmatprep.subr.bf16.mxu1 %v4398_v22  ;;  %v4483_v21 = vld [vmem:[#allocation9 + $0x6c8] ss:$16 sps:$4 sm:$0xff]   ;;  %v4488_v22 = vld [vmem:[#allocation9 + $0x6e4] ss:$16 sps:$4 sm:$0xff]  }
 0x246   : > { %2868 = vmatprep.subr.bf16.mxu0 %v4401_v23  ;;  %v4491_v23 = vld [vmem:[#allocation9 + $0x6ec] ss:$16 sps:$4 sm:$0xff]  }
 0x248   : > { %2654 = vmatpush1.bf16.msra.mxu1 %v4396_v24  ;;  %v4486_v24 = vld [vmem:[#allocation9 + $0x6e0] ss:$16 sps:$4 sm:$0xff]  }
 0x249   : > { %2869 = vmatpush1.bf16.msra.mxu0 %v4399_v27  ;;  %2655 = vmatprep.subr.bf16.mxu1 %v4404_v28  ;;  %v4489_v27 = vld [vmem:[#allocation9 + $0x6e8] ss:$16 sps:$4 sm:$0xff]   ;;  %v4494_v28 = vld [vmem:[#allocation9 + $0x704] ss:$16 sps:$4 sm:$0xff]  }
 0x24a   : > { %2870 = vmatprep.subr.bf16.mxu0 %v4407_v29  ;;  %v4497_v29 = vld [vmem:[#allocation9 + $0x70c] ss:$16 sps:$4 sm:$0xff]  }
 0x24c   : > { %2656 = vmatpush1.bf16.msra.mxu1 %v4402_v30  ;;  %v4492_v30 = vld [vmem:[#allocation9 + $0x700] ss:$16 sps:$4 sm:$0xff]  }
 0x24d   : > { %2871 = vmatpush1.bf16.msra.mxu0 %v4405_v31  ;;  %2657 = vmatprep.subr.bf16.mxu1 %v4410_v32  ;;  %v4495_v31 = vld [vmem:[#allocation9 + $0x708] ss:$16 sps:$4 sm:$0xff]   ;;  %v4500_v32 = vld [vmem:[#allocation9 + $0x724] ss:$16 sps:$4 sm:$0xff]  }
 0x24e   : > { %2872 = vmatprep.subr.bf16.mxu0 %v4413_v33  ;;  %v4503_v33 = vld [vmem:[#allocation9 + $0x72c] ss:$16 sps:$4 sm:$0xff]  }
 0x250   : > { %2658 = vmatpush1.bf16.msra.mxu1 %v4408_v34  ;;  %v4498_v34 = vld [vmem:[#allocation9 + $0x720] ss:$16 sps:$4 sm:$0xff]  }
 0x251   : > { %2873 = vmatpush1.bf16.msra.mxu0 %v4411_v35  ;;  %2659 = vmatprep.subr.bf16.mxu1 %v4416_v36  ;;  %v4501_v35 = vld [vmem:[#allocation9 + $0x728] ss:$16 sps:$4 sm:$0xff]   ;;  %v4506_v36 = vld [vmem:[#allocation9 + $0x744] ss:$16 sps:$4 sm:$0xff]  }
 0x252   : > { %2874 = vmatprep.subr.bf16.mxu0 %v4419_v38  ;;  %v4509_v38 = vld [vmem:[#allocation9 + $0x74c] ss:$16 sps:$4 sm:$0xff]  }
 0x254   : > { %2660 = vmatpush1.bf16.msra.mxu1 %v4414_v42  ;;  %v4504_v42 = vld [vmem:[#allocation9 + $0x740] ss:$16 sps:$4 sm:$0xff]  }
 0x255   : > { %2875 = vmatpush1.bf16.msra.mxu0 %v4417_v43  ;;  %2661 = vmatprep.subr.bf16.mxu1 %v4422_v37  ;;  %v4507_v43 = vld [vmem:[#allocation9 + $0x748] ss:$16 sps:$4 sm:$0xff]   ;;  %v4512_v37 = vld [vmem:[#allocation9 + $0x764] ss:$16 sps:$4 sm:$0xff]  }
 0x256   : > { %2876 = vmatprep.subr.bf16.mxu0 %v4425_v39  ;;  %v4515_v39 = vld [vmem:[#allocation9 + $0x76c] ss:$16 sps:$4 sm:$0xff]  }
 0x258   : > { %2662 = vmatpush1.bf16.msra.mxu1 %v4420_v46  ;;  %v4510_v46 = vld [vmem:[#allocation9 + $0x760] ss:$16 sps:$4 sm:$0xff]  }
 0x259   : > { %2877 = vmatpush1.bf16.msra.mxu0 %v4423_v47  ;;  %2663 = vmatprep.subr.bf16.mxu1 %v4428_v48  ;;  %v4513_v47 = vld [vmem:[#allocation9 + $0x768] ss:$16 sps:$4 sm:$0xff]   ;;  %v4518_v48 = vld [vmem:[#allocation9 + $0x784] ss:$16 sps:$4 sm:$0xff]  }
 0x25a   : > { %2878 = vmatprep.subr.bf16.mxu0 %v4431_v49  ;;  %v4521_v49 = vld [vmem:[#allocation9 + $0x78c] ss:$16 sps:$4 sm:$0xff]  }
 0x25c   : > { %2664 = vmatpush1.bf16.msra.mxu1 %v4426_v53  ;;  %v4516_v53 = vld [vmem:[#allocation9 + $0x780] ss:$16 sps:$4 sm:$0xff]  }
 0x25d   : > { %2879 = vmatpush1.bf16.msra.mxu0 %v4429_v54  ;;  %2665 = vmatprep.subr.bf16.mxu1 %v4434_v40  ;;  %v4519_v54 = vld [vmem:[#allocation9 + $0x788] ss:$16 sps:$4 sm:$0xff]   ;;  %v4524_v40 = vld [vmem:[#allocation9 + $0x7a4] ss:$16 sps:$4 sm:$0xff]  }
 0x25e   : > { %2880 = vmatprep.subr.bf16.mxu0 %v4437_v41  ;;  %v4527_v41 = vld [vmem:[#allocation9 + $0x7ac] ss:$16 sps:$4 sm:$0xff]  }
 0x260   : > { %2666 = vmatpush1.bf16.msra.mxu1 %v4432_v56  ;;  %v4522_v56 = vld [vmem:[#allocation9 + $0x7a0] ss:$16 sps:$4 sm:$0xff]  }
 0x261   : > { %2881 = vmatpush1.bf16.msra.mxu0 %v4435_v57  ;;  %2667 = vmatprep.subr.bf16.mxu1 %v4440_v58  ;;  %v4525_v57 = vld [vmem:[#allocation9 + $0x7a8] ss:$16 sps:$4 sm:$0xff]   ;;  %v4530_v58 = vld [vmem:[#allocation9 + $0x7c4] ss:$16 sps:$4 sm:$0xff]  }
 0x262   : > { %2882 = vmatprep.subr.bf16.mxu0 %v4443_v59  ;;  %v4533_v59 = vld [vmem:[#allocation9 + $0x7cc] ss:$16 sps:$4 sm:$0xff]  }
 0x264   : > { %2668 = vmatpush1.bf16.msra.mxu1 %v4438_v45  ;;  %v4528_v45 = vld [vmem:[#allocation9 + $0x7c0] ss:$16 sps:$4 sm:$0xff]  }
 0x265   : > { %2883 = vmatpush1.bf16.msra.mxu0 %v4441_v60  ;;  %2680 = vmatprep.subr.bf16.mxu1 %v4446_v61  ;;  %v4531_v60 = vld [vmem:[#allocation9 + $0x7c8] ss:$16 sps:$4 sm:$0xff]   ;;  %v4536_v61 = vld [vmem:[#allocation9 + $0x7e4] ss:$16 sps:$4 sm:$0xff]  }
 0x266   : > { %2895 = vmatprep.subr.bf16.mxu0 %v4449_v62  ;;  %v4539_v62 = vld [vmem:[#allocation9 + $0x7ec] ss:$16 sps:$4 sm:$0xff]  }
 0x267   : > { %2670 = vmatmul.mubr.bf16.vlgmr.msra.gmra.mrb[0].mxu1 %v5412_v50 }
 0x268   : > { %2885 = vmatmul.mubr.bf16.vlgmr.msra.gmra.mrb[4].mxu0 %v5412_v50  ;;  %2681 = vmatpush1.bf16.msra.mxu1 %v4444_v63  ;;  %v4467_v50 = vld [vmem:[#allocation9 + $0x66c] ss:$16 sps:$4 sm:$0xff]   ;;  %v4534_v63 = vld [vmem:[#allocation9 + $0x7e0] ss:$16 sps:$4 sm:$0xff]  }
 0x269   : > { %2712 = vmatprep.mubr.bf16.mxu1 %v5414_v51  ;;  %2896 = vmatpush1.bf16.msra.mxu0 %v4447_v1  ;;  %v4537_v1 = vld [vmem:[#allocation9 + $0x7e8] ss:$16 sps:$4 sm:$0xff]  }
 0x26a   : > { %2927 = vmatprep.mubr.bf16.mxu0 %v5414_v51  ;;  %2682 = vmatprep.subr.bf16.mxu1 %v4452_v2  ;;  %v4468_v51 = vld [vmem:[#allocation9 + $0x680] ss:$16 sps:$4 sm:$0xff]   ;;  %v4542_v2 = vld [vmem:[#allocation9 + $0x804] ss:$16 sps:$4 sm:$0xff]  }
 0x26b   : > { %2897 = vmatprep.subr.bf16.mxu0 %v4455_v3  ;;  %v4545_v3 = vld [vmem:[#allocation9 + $0x80c] ss:$16 sps:$4 sm:$0xff]  }
 0x26c   : > { %2683 = vmatpush1.bf16.msra.mxu1 %v4450_v4  ;;  %v4540_v4 = vld [vmem:[#allocation9 + $0x800] ss:$16 sps:$4 sm:$0xff]  }
 0x26d   : > { %2898 = vmatpush1.bf16.msra.mxu0 %v4453_v25  ;;  %2684 = vmatprep.subr.bf16.mxu1 %v4458_v5  ;;  %v4543_v25 = vld [vmem:[#allocation9 + $0x808] ss:$16 sps:$4 sm:$0xff]   ;;  %v4548_v5 = vld [vmem:[#allocation9 + $0x824] ss:$16 sps:$4 sm:$0xff]  }
 0x26e   : > { %2899 = vmatprep.subr.bf16.mxu0 %v4461_v6  ;;  %v4551_v6 = vld [vmem:[#allocation9 + $0x82c] ss:$16 sps:$4 sm:$0xff]  }
 0x270   : > { %2685 = vmatpush1.bf16.msra.mxu1 %v4456_v7  ;;  %v4546_v7 = vld [vmem:[#allocation9 + $0x820] ss:$16 sps:$4 sm:$0xff]  }
 0x271   : > { %2900 = vmatpush1.bf16.msra.mxu0 %v4459_v44  ;;  %2686 = vmatprep.subr.bf16.mxu1 %v4464_v8  ;;  %v4549_v44 = vld [vmem:[#allocation9 + $0x828] ss:$16 sps:$4 sm:$0xff]   ;;  %v4554_v8 = vld [vmem:[#allocation9 + $0x844] ss:$16 sps:$4 sm:$0xff]  }
 0x272   : > { %2901 = vmatprep.subr.bf16.mxu0 %v4467_v50  ;;  %v4557_v50 = vld [vmem:[#allocation9 + $0x84c] ss:$16 sps:$4 sm:$0xff]  }
 0x274   : > { %2687 = vmatpush1.bf16.msra.mxu1 %v4462_v9  ;;  %v4552_v9 = vld [vmem:[#allocation9 + $0x840] ss:$16 sps:$4 sm:$0xff]  }
 0x275   : > { %2902 = vmatpush1.bf16.msra.mxu0 %v4465_v10  ;;  %2688 = vmatprep.subr.bf16.mxu1 %v4470_v11  ;;  %v4555_v10 = vld [vmem:[#allocation9 + $0x848] ss:$16 sps:$4 sm:$0xff]   ;;  %v4560_v11 = vld [vmem:[#allocation9 + $0x864] ss:$16 sps:$4 sm:$0xff]  }
 0x276   : > { %2903 = vmatprep.subr.bf16.mxu0 %v4473_v12  ;;  %v4558_v12 = vld [vmem:[#allocation9 + $0x860] ss:$16 sps:$4 sm:$0xff]  }
 0x278   : > { %2689 = vmatpush1.bf16.msra.mxu1 %v4468_v51  ;;  %v4561_v51 = vld [vmem:[#allocation9 + $0x868] ss:$16 sps:$4 sm:$0xff]  }
 0x279   : > { %2904 = vmatpush1.bf16.msra.mxu0 %v4471_v13  ;;  %2690 = vmatprep.subr.bf16.mxu1 %v4476_v14  ;;  %v4566_v13 = vld [vmem:[#allocation9 + $0x884] ss:$16 sps:$4 sm:$0xff]   ;;  %v4569_v14 = vld [vmem:[#allocation9 + $0x88c] ss:$16 sps:$4 sm:$0xff]  }
 0x27a   : > { %2905 = vmatprep.subr.bf16.mxu0 %v4479_v15  ;;  %v4564_v15 = vld [vmem:[#allocation9 + $0x880] ss:$16 sps:$4 sm:$0xff]  }
 0x27c   : > { %2691 = vmatpush1.bf16.msra.mxu1 %v4474_v16  ;;  %v4572_v16 = vld [vmem:[#allocation9 + $0x8a4] ss:$16 sps:$4 sm:$0xff]  }
 0x27d   : > { %2906 = vmatpush1.bf16.msra.mxu0 %v4477_v17  ;;  %2692 = vmatprep.subr.bf16.mxu1 %v4482_v18  ;;  %v4575_v17 = vld [vmem:[#allocation9 + $0x8ac] ss:$16 sps:$4 sm:$0xff]   ;;  %v4570_v18 = vld [vmem:[#allocation9 + $0x8a0] ss:$16 sps:$4 sm:$0xff]  }
 0x27e   : > { %2907 = vmatprep.subr.bf16.mxu0 %v4485_v19  ;;  %v4573_v19 = vld [vmem:[#allocation9 + $0x8a8] ss:$16 sps:$4 sm:$0xff]  }
 0x280   : > { %2693 = vmatpush1.bf16.msra.mxu1 %v4480_v20  ;;  %v4578_v20 = vld [vmem:[#allocation9 + $0x8c4] ss:$16 sps:$4 sm:$0xff]  }
 0x281   : > { %2908 = vmatpush1.bf16.msra.mxu0 %v4483_v21  ;;  %2694 = vmatprep.subr.bf16.mxu1 %v4488_v22  ;;  %v4581_v21 = vld [vmem:[#allocation9 + $0x8cc] ss:$16 sps:$4 sm:$0xff]   ;;  %v4576_v22 = vld [vmem:[#allocation9 + $0x8c0] ss:$16 sps:$4 sm:$0xff]  }
 0x282   : > { %2909 = vmatprep.subr.bf16.mxu0 %v4491_v23  ;;  %v4579_v23 = vld [vmem:[#allocation9 + $0x8c8] ss:$16 sps:$4 sm:$0xff]  }
 0x284   : > { %2695 = vmatpush1.bf16.msra.mxu1 %v4486_v24  ;;  %v4584_v24 = vld [vmem:[#allocation9 + $0x8e4] ss:$16 sps:$4 sm:$0xff]  }
 0x285   : > { %2910 = vmatpush1.bf16.msra.mxu0 %v4489_v27  ;;  %2696 = vmatprep.subr.bf16.mxu1 %v4494_v28  ;;  %v4587_v27 = vld [vmem:[#allocation9 + $0x8ec] ss:$16 sps:$4 sm:$0xff]   ;;  %v4582_v28 = vld [vmem:[#allocation9 + $0x8e0] ss:$16 sps:$4 sm:$0xff]  }
 0x286   : > { %2911 = vmatprep.subr.bf16.mxu0 %v4497_v29  ;;  %v4585_v29 = vld [vmem:[#allocation9 + $0x8e8] ss:$16 sps:$4 sm:$0xff]  }
 0x288   : > { %2697 = vmatpush1.bf16.msra.mxu1 %v4492_v30  ;;  %v4588_v30 = vld [vmem:[#allocation12 + $0x40] sm:$0xff]  }
 0x289   : > { %2912 = vmatpush1.bf16.msra.mxu0 %v4495_v31  ;;  %2698 = vmatprep.subr.bf16.mxu1 %v4500_v32  ;;  %v4589_v31 = vld [vmem:[#allocation12] sm:$0xff]   ;;  %v4590_v32 = vld [vmem:[#allocation12 + $0x48] sm:$0xff]  }
 0x28a   : > { %2913 = vmatprep.subr.bf16.mxu0 %v4503_v33  ;;  %v4591_v33 = vld [vmem:[#allocation12 + $0x8] sm:$0xff]  }
 0x28c   : > { %2699 = vmatpush1.bf16.msra.mxu1 %v4498_v34  ;;  %v4592_v34 = vld [vmem:[#allocation12 + $0x50] sm:$0xff]  }
 0x28d   : > { %2914 = vmatpush1.bf16.msra.mxu0 %v4501_v35  ;;  %2700 = vmatprep.subr.bf16.mxu1 %v4506_v36  ;;  %v4593_v35 = vld [vmem:[#allocation12 + $0x10] sm:$0xff]   ;;  %v4594_v36 = vld [vmem:[#allocation12 + $0x58] sm:$0xff]  }
 0x28e   : > { %2915 = vmatprep.subr.bf16.mxu0 %v4509_v38  ;;  %v4595_v38 = vld [vmem:[#allocation12 + $0x18] sm:$0xff]  }
 0x290   : > { %2701 = vmatpush1.bf16.msra.mxu1 %v4504_v42  ;;  %v4596_v42 = vld [vmem:[#allocation12 + $0x60] sm:$0xff]  }
 0x291   : > { %2916 = vmatpush1.bf16.msra.mxu0 %v4507_v43  ;;  %2702 = vmatprep.subr.bf16.mxu1 %v4512_v37  ;;  %v4597_v43 = vld [vmem:[#allocation12 + $0x20] sm:$0xff]   ;;  %v4598_v37 = vld [vmem:[#allocation12 + $0x68] sm:$0xff]  }
 0x292   : > { %2917 = vmatprep.subr.bf16.mxu0 %v4515_v39  ;;  %v4599_v39 = vld [vmem:[#allocation12 + $0x28] sm:$0xff]  }
 0x294   : > { %2703 = vmatpush1.bf16.msra.mxu1 %v4510_v46  ;;  %v4601_v46 = vld [vmem:[#allocation12 + $0x30] sm:$0xff]  }
 0x295   : > { %2918 = vmatpush1.bf16.msra.mxu0 %v4513_v47  ;;  %2704 = vmatprep.subr.bf16.mxu1 %v4518_v48  ;;  %v4602_v47 = vld [vmem:[#allocation12 + $0x78] sm:$0xff]  }
 0x296   : > { %2919 = vmatprep.subr.bf16.mxu0 %v4521_v49  ;;  %v4603_v48 = vld [vmem:[#allocation12 + $0x38] sm:$0xff]   ;;  %v4604_v49 = vld [vmem:[#allocation12 + $0xc0] sm:$0xff]  }
 0x298   : > { %2705 = vmatpush1.bf16.msra.mxu1 %v4516_v53  ;;  %v1093_v53 = vsub.s32 0, %v5363_v52 }
 0x299   : > { %2920 = vmatpush1.bf16.msra.mxu0 %v4519_v54  ;;  %2706 = vmatprep.subr.bf16.mxu1 %v4524_v40  ;;  %v1089_v54 = vld [vmem:[#allocation11] sm:$0xf]  ;;  %v1101_v40 = vsub.s32 2, %v5363_v52 }
 0x29a   : > { %2921 = vmatprep.subr.bf16.mxu0 %v4527_v41  ;;  %v1097_v41 = vsub.s32 1, %v5363_v52 }
 0x29c   : > { %2707 = vmatpush1.bf16.msra.mxu1 %v4522_v56  ;;  %v1105_v56 = vsub.s32 3, %v5363_v52 }
 0x29d   : > { %2922 = vmatpush1.bf16.msra.mxu0 %v4525_v57  ;;  %2708 = vmatprep.subr.bf16.mxu1 %v4530_v58  ;;  %v1094_v57 = vrot.slane %v1089_v54, %v1093_v53  ;;  %v1102_v58 = vrot.slane %v1089_v54, %v1101_v40 }
 0x29e   : > { %2923 = vmatprep.subr.bf16.mxu0 %v4533_v59  ;;  %v1098_v59 = vrot.slane %v1089_v54, %v1097_v41 }
 0x2a0   : > { %2709 = vmatpush1.bf16.msra.mxu1 %v4528_v45  ;;  %v1106_v45 = vrot.slane %v1089_v54, %v1105_v56 }
 0x2a1   : > { %2924 = vmatpush1.bf16.msra.mxu0 %v4531_v60  ;;  %2710 = vmatprep.subr.bf16.mxu1 %v4536_v61 }
 0x2a2   : > { %2925 = vmatprep.subr.bf16.mxu0 %v4539_v62 }
 0x2a4   : > { %2711 = vmatpush1.bf16.msra.mxu1 %v4534_v63 }
 0x2a5   : > { %2926 = vmatpush1.bf16.msra.mxu0 %v4537_v1  ;;  %2723 = vmatprep.subr.bf16.mxu1 %v4542_v2 }
 0x2a6   : > { %2938 = vmatprep.subr.bf16.mxu0 %v4545_v3 }
 0x2a7   : > { %2713 = vmatmul.mubr.bf16.vlgmr.msra.gmra.mrb[0].mxu1 %v5417_v55 }
 0x2a8   : > { %2928 = vmatmul.mubr.bf16.vlgmr.msra.gmra.mrb[4].mxu0 %v5417_v55  ;;  %2724 = vmatpush1.bf16.msra.mxu1 %v4540_v4  ;;  %v4563_v55 = vld [vmem:[#allocation9 + $0x86c] ss:$16 sps:$4 sm:$0xff]  }
 0x2a9   : > { %2939 = vmatpush1.bf16.msra.mxu0 %v4543_v25  ;;  %2725 = vmatprep.subr.bf16.mxu1 %v4548_v5 }
 0x2aa   : > { %2940 = vmatprep.subr.bf16.mxu0 %v4551_v6  ;;  %2755 = vmatprep.mubr.bf16.mxu1 %v4943_v0 }
 0x2ab   : > { %2970 = vmatprep.mubr.bf16.mxu0 %v4943_v0  ;;  %v4567_v0 = vld [vmem:[#allocation9 + $0x888] ss:$16 sps:$4 sm:$0xff]  }
 0x2ac   : > { %2726 = vmatpush1.bf16.msra.mxu1 %v4546_v7 }
 0x2ad   : > { %2941 = vmatpush1.bf16.msra.mxu0 %v4549_v44  ;;  %2727 = vmatprep.subr.bf16.mxu1 %v4554_v8 }
 0x2ae   : > { %2942 = vmatprep.subr.bf16.mxu0 %v4557_v50 }
 0x2b0   : > { %2728 = vmatpush1.bf16.msra.mxu1 %v4552_v9 }
 0x2b1   : > { %2943 = vmatpush1.bf16.msra.mxu0 %v4555_v10  ;;  %2729 = vmatprep.subr.bf16.mxu1 %v4560_v11 }
 0x2b2   : > { %2944 = vmatprep.subr.bf16.mxu0 %v4563_v55 }
 0x2b4   : > { %2730 = vmatpush1.bf16.msra.mxu1 %v4558_v12 }
 0x2b5   : > { %2945 = vmatpush1.bf16.msra.mxu0 %v4561_v51  ;;  %2731 = vmatprep.subr.bf16.mxu1 %v4566_v13 }
 0x2b6   : > { %2946 = vmatprep.subr.bf16.mxu0 %v4569_v14 }
 0x2b8   : > { %2732 = vmatpush1.bf16.msra.mxu1 %v4564_v15 }
 0x2b9   : > { %2947 = vmatpush1.bf16.msra.mxu0 %v4567_v0  ;;  %2733 = vmatprep.subr.bf16.mxu1 %v4572_v16 }
 0x2ba   : > { %2948 = vmatprep.subr.bf16.mxu0 %v4575_v17  ;;  %v4605_v17 = vld [vmem:[#allocation12 + $0x80] sm:$0xff]  }
 0x2bc   : > { %2734 = vmatpush1.bf16.msra.mxu1 %v4570_v18 }
 0x2bd   : > { %2949 = vmatpush1.bf16.msra.mxu0 %v4573_v19  ;;  %2735 = vmatprep.subr.bf16.mxu1 %v4578_v20  ;;  %v4606_v19 = vld [vmem:[#allocation12 + $0xc8] sm:$0xff]  }
 0x2be   : > { %2950 = vmatprep.subr.bf16.mxu0 %v4581_v21  ;;  %v4607_v20 = vld [vmem:[#allocation12 + $0x88] sm:$0xff]   ;;  %v4608_v21 = vld [vmem:[#allocation12 + $0xd0] sm:$0xff]  }
 0x2c0   : > { %2736 = vmatpush1.bf16.msra.mxu1 %v4576_v22  ;;  %v4609_v22 = vld [vmem:[#allocation12 + $0x90] sm:$0xff]  }
 0x2c1   : > { %2951 = vmatpush1.bf16.msra.mxu0 %v4579_v23  ;;  %2737 = vmatprep.subr.bf16.mxu1 %v4584_v24  ;;  %v4610_v23 = vld [vmem:[#allocation12 + $0xd8] sm:$0xff]  }
 0x2c2   : > { %2952 = vmatprep.subr.bf16.mxu0 %v4587_v27  ;;  %v4611_v24 = vld [vmem:[#allocation12 + $0x98] sm:$0xff]   ;;  %v4612_v27 = vld [vmem:[#allocation12 + $0xe0] sm:$0xff]  }
 0x2c4   : > { %2738 = vmatpush1.bf16.msra.mxu1 %v4582_v28  ;;  %v4613_v28 = vld [vmem:[#allocation12 + $0xa0] sm:$0xff]  }
 0x2c5   : > { %2953 = vmatpush1.bf16.msra.mxu0 %v4585_v29  ;;  %3932 = vmatprep.subr.bf16.mxu1 %v4588_v30  ;;  %v4614_v29 = vld [vmem:[#allocation12 + $0xe8] sm:$0xff]  }
 0x2c6   : > { %v4615_v30 = vld [vmem:[#allocation12 + $0xa8] sm:$0xff]  }
 0x2c7   : > { %2756 = vmatmul.mubr.bf16.vlgmr.msra.gmra.mrb[0].mxu1 %v5393_v26 }
 0x2c8   : > { %2971 = vmatmul.mubr.bf16.vlgmr.msra.gmra.mrb[4].mxu0 %v5393_v26  ;;  %3933 = vmatpush3.bf16.msra.mxu1 %v4589_v31  ;;  %v4600_v26 = vld [vmem:[#allocation12 + $0x70] sm:$0xff]  }
 0x2c9   : > { %3934 = vmatprep.subr.bf16.mxu1 %v4590_v32  ;;  %v4616_v31 = vld [vmem:[#allocation12 + $0xf0] sm:$0xff]  }
 0x2ca   : > { %v4617_v32 = vld [vmem:[#allocation12 + $0xb0] sm:$0xff]  }
 0x2cc   : > { %3935 = vmatpush3.bf16.msra.mxu1 %v4591_v33  ;;  %v4618_v33 = vld [vmem:[#allocation12 + $0xf8] sm:$0xff]  }
 0x2cd   : > { %3936 = vmatprep.subr.bf16.mxu1 %v4592_v34  ;;  %v4619_v34 = vld [vmem:[#allocation12 + $0xb8] sm:$0xff]  }
 0x2d0   : > { %3937 = vmatpush3.bf16.msra.mxu1 %v4593_v35 }
 0x2d1   : > { %3938 = vmatprep.subr.bf16.mxu1 %v4594_v36 }
 0x2d4   : > { %3939 = vmatpush3.bf16.msra.mxu1 %v4595_v38 }
 0x2d5   : > { %3940 = vmatprep.subr.bf16.mxu1 %v4596_v42 }
 0x2d8   : > { %3941 = vmatpush3.bf16.msra.mxu1 %v4597_v43 }
 0x2d9   : > { %3942 = vmatprep.subr.bf16.mxu1 %v4598_v37 }
 0x2dc   : > { %3943 = vmatpush3.bf16.msra.mxu1 %v4599_v39 }
 0x2dd   : > { %3944 = vmatprep.subr.bf16.mxu1 %v4600_v26 }
 0x2e0   : > { %3945 = vmatpush3.bf16.msra.mxu1 %v4601_v46 }
 0x2e1   : > { %3946 = vmatprep.subr.bf16.mxu1 %v4602_v47 }
 0x2e4   : > { %3947 = vmatpush3.bf16.msra.mxu1 %v4603_v48 }
 0x2e5   : > { %3954 = vmatprep.subr.bf16.mxu1 %v4604_v49 }
 0x39a   : > { %v2757_v60 = vpop.f32.mrb[0].mxu1 }
 0x39b   : > { %v3976_v61 = vadd.f32 %v2757_v60, %v1094_v57  ;;  %v2972_v62 = vpop.f32.mrb[4].mxu0  ;;  %v2759_v63 = vpop.f32.mrb[1].mxu1 }
 0x39c   : > { %v3980_v1 = vadd.f32 %v2972_v62, %v1102_v58  ;;  %v3977_v2 = vadd.f32 %v2759_v63, %v1098_v59  ;;  %v2974_v3 = vpop.f32.mrb[5].mxu0  ;;  %v2761_v4 = vpop.f32.mrb[2].mxu1 }
 0x39d   : > { %v3981_v25 = vadd.f32 %v2974_v3, %v1106_v45  ;;  %v3978_v5 = vadd.f32 %v2761_v4, %v1094_v57  ;;  %v2976_v6 = vpop.f32.mrb[6].mxu0  ;;  %v2763_v7 = vpop.f32.mrb[3].mxu1  ;;  %v2981_v52 = vmax.f32 %v3976_v61, 0.0 }
 0x39e   : > { %v3982_v44 = vadd.f32 %v2976_v6, %v1102_v58  ;;  %v3979_v8 = vadd.f32 %v2763_v7, %v1098_v59  ;;  %v2978_v50 = vpop.f32.mrb[7].mxu0  ;;  %v2983_v11 = vmax.f32 %v3980_v1, 0.0  ;;  %v2982_v55 = vmax.f32 %v3977_v2, 0.0 }
 0x39f   : > { %v2985_v9 = vmax.f32 %v3978_v5, 0.0  ;;  %v3983_v10 = vadd.f32 %v2978_v50, %v1106_v45  ;;  %v2984_v13 = vmax.f32 %v3981_v25, 0.0 }
 0x3a0   : > { %v2987_v12 = vmax.f32 %v3982_v44, 0.0  ;;  %v2986_v51 = vmax.f32 %v3979_v8, 0.0 }
 0x3a1   : > { %v2989_v14 = vpack.c.bf16 %v2985_v9, %v2981_v52  ;;  %v2988_v15 = vmax.f32 %v3983_v10, 0.0 }
 0x3a2   : > { %v2991_v0 = vpack.c.bf16 %v2987_v12, %v2983_v11  ;;  %v2990_v16 = vpack.c.bf16 %v2986_v51, %v2982_v55 }
 0x3a3   : > { %v2992_v18 = vpack.c.bf16 %v2988_v15, %v2984_v13 }
 0x3a4   : > { %3288 = vmatprep.mubr.bf16.mxu1 %v2990_v16 }
 0x3a5   : > { %3289 = vmatmul.mubr.bf16.vlgmr.msra.gmra.mrb[4].mxu1 %v2989_v14 }
 0x3a6   : > { %3955 = vmatpush3.bf16.msra.mxu1 %v4605_v17  ;;  %3329 = vmatprep.mubr.bf16.mxu1 %v2992_v18 }
 0x3a7   : > { %3956 = vmatprep.subr.bf16.mxu1 %v4606_v19 }
 0x3aa   : > { %3957 = vmatpush3.bf16.msra.mxu1 %v4607_v20 }
 0x3ab   : > { %3958 = vmatprep.subr.bf16.mxu1 %v4608_v21 }
 0x3ae   : > { %3959 = vmatpush3.bf16.msra.mxu1 %v4609_v22 }
 0x3af   : > { %3960 = vmatprep.subr.bf16.mxu1 %v4610_v23 }
 0x3b2   : > { %3961 = vmatpush3.bf16.msra.mxu1 %v4611_v24 }
 0x3b3   : > { %3962 = vmatprep.subr.bf16.mxu1 %v4612_v27 }
 0x3b6   : > { %3963 = vmatpush3.bf16.msra.mxu1 %v4613_v28 }
 0x3b7   : > { %3964 = vmatprep.subr.bf16.mxu1 %v4614_v29 }
 0x3ba   : > { %3965 = vmatpush3.bf16.msra.mxu1 %v4615_v30 }
 0x3bb   : > { %3966 = vmatprep.subr.bf16.mxu1 %v4616_v31 }
 0x3be   : > { %3967 = vmatpush3.bf16.msra.mxu1 %v4617_v32 }
 0x3bf   : > { %3968 = vmatprep.subr.bf16.mxu1 %v4618_v33 }
 0x3c2   : > { %3969 = vmatpush3.bf16.msra.mxu1 %v4619_v34 }
 0x3c5   : > { %3330 = vmatmul.mubr.bf16.vlgmr.msra.gmra.mrb[8].mxu1 %v2991_v0 }
 0x3c6   : > { %4831 = shalt.err (!%p4828_p8)
}
 0x3c7   : > { %s4832_s14 = scalar_lea.hbm %s5443_s28, 128  ;;  %s4836_s24 = scalar_lea.hbm %s5532_s8, 256 }
 0x3c8   : > { %p4833_p7 = scmp.ne.s32.totalorder %s5443_s28, %s4832_s14  ;;  %p4837_p3 = scmp.lt.u32.totalorder %s5443_s28, %s5532_s8 }
 0x3c9   : > { %p4838_p0 = scmp.lt.u32.totalorder %s4836_s24, %s4832_s14  ;;  %p4840_p6 = scmp.lt.u32.totalorder %s4832_s14, %s5443_s28 }
 0x3ca   : > { %p4834_p9 = pnand %p4833_p7, %p5559_p5 }
 0x3cb   : > { %p4839_p2 = por %p4838_p0, %p4837_p3 }
 0x3cc   : > { %p4835_p4 = pneg %p4834_p9 }
 0x3cd   : > { %p4841_p10 = por %p4840_p6, %p4839_p2 }
 0x3cf   : > { %p4842_p1 = pnand %p4841_p10, %p4835_p4 }
 0x3d1   : > { %4845 = shalt.err (!%p4842_p1)
}
 0x3d2   : > { %s4945_s22 = smov 64   ;;  %s4946_s20 = smov 4   ;;  %v3881_v39 = vld [vmem:[#allocation14] ss:$0 sm:$0xff] }
 0x3d3   : > { %4042 = dma.vmem_to_hbm [thread:$0]  (%p5559_p5), %s5446_s17, 128, %s5443_s28, %s3341_s18, %s4945_s22, %s4945_s22, %s4946_s20  }
 0x3d4   : > { %s442_s13 = scalar_lea.vmem [#allocation16], %s3550_s26  ;;  %s3926_s28 = sshll.u32 %s5021_s15, 8 }
 0x3d5   : > { %s3375_s14 = sshll.u32 %s442_s13, 4  ;;  %s5560_s26 = sld [smem:[#allocation25_spill]]  ;;  %s5475_s14 = int_to_ptr.vmem [resolvable:$true] %s3375_s14 }
 0x3d6   : > { %s3346_s27 = scalar_lea.sflag [#allocation17], %s5257_s29  ;;  %s4846_s24 = scalar_lea.vmem %s5475_s14, 256 }
 0x3d7   : > { %p4847_p11 = scmp.ne.s32.totalorder %s5475_s14, %s4846_s24  ;;  %s4947_s15 = smov [#allocation16]  }
 0x3d8   : > { %s4850_s25 = sshll.u32 %s4947_s15, 4  ;;  %s4851_s25 = int_to_ptr.vmem [resolvable:$false] %s4850_s25 }
 0x3d9   : > { %p4848_p12 = pnand %p4847_p11, %p5559_p5  ;;  %s4852_s16 = scalar_lea.vmem %s4851_s25, 512 }
 0x3da   : > { %p4853_p8 = scmp.lt.s32.totalorder %s5475_s14, %s4851_s25  ;;  %p4854_p7 = scmp.lt.s32.totalorder %s4852_s16, %s4846_s24 }
 0x3db   : > { %s5480_s23 = scalar_lea.hbm %s5560_s26, %s3926_s28  ;;  %p4849_p13 = pneg %p4848_p12 }
 0x3dc   : > { %p4855_p9 = por %p4854_p7, %p4853_p8 }
 0x3de   : > { %p4856_p4 = pnand %p4855_p9, %p4849_p13 }
 0x478   : > { %v3948_v35 = vpop.f32.mrb[4].mxu1 }
 0x479   : > { %v3949_v36 = vpop.f32.mrb[5].mxu1 }
 0x47a   : > { %v3950_v38 = vadd.f32 %v3949_v36, %v3948_v35  ;;  %v3951_v42 = vpop.f32.mrb[6].mxu1 }
 0x47b   : > { %v3952_v43 = vpop.f32.mrb[7].mxu1 }
 0x47c   : > { %v3953_v37 = vadd.f32 %v3952_v43, %v3951_v42  ;;  %v3291_v47 = vadd.f32 %v3950_v38, %v3881_v39 }
 0x47e   : > { %v3294_v54 = vadd.f32 %v3953_v37, %v3881_v39 }
 0x498   : > { %v3970_v26 = vpop.f32.mrb[8].mxu1 }
 0x499   : > { %v3971_v46 = vpop.f32.mrb[9].mxu1 }
 0x49a   : > { %v3972_v48 = vadd.f32 %v3971_v46, %v3970_v26  ;;  %v3973_v49 = vpop.f32.mrb[10].mxu1 }
 0x49b   : > { %v3974_v53 = vpop.f32.mrb[11].mxu1 }
 0x49c   : > { %v3332_v40 = vadd.f32 %v3972_v48, %v3291_v47  ;;  %v3975_v41 = vadd.f32 %v3974_v53, %v3973_v49 }
 0x49e   : > { %3338 = vst [vmem:[%s442_s13] sm:$0xff] %v3332_v40  ;;  %v3335_v56 = vadd.f32 %v3975_v41, %v3294_v54 }
 0x4a0   : > { %3339 = vst [vmem:[%s442_s13 + $0x8] sm:$0xff] %v3335_v56 }
 0x4a1   : > { %4859 = shalt.err (!%p4856_p4)
}
 0x4a2   : > { %s4860_s22 = scalar_lea.hbm %s5480_s23, 256  ;;  %s4864_s28 = scalar_lea.hbm %s5560_s26, 512 }
 0x4a3   : > { %p4861_p3 = scmp.ne.s32.totalorder %s5480_s23, %s4860_s22  ;;  %p4865_p6 = scmp.lt.u32.totalorder %s5480_s23, %s5560_s26 }
 0x4a4   : > { %p4866_p10 = scmp.lt.u32.totalorder %s4864_s28, %s4860_s22  ;;  %p4868_p11 = scmp.lt.u32.totalorder %s4860_s22, %s5480_s23 }
 0x4a5   : > { %p4862_p0 = pnand %p4861_p3, %p5559_p5 }
 0x4a6   : > { %p4867_p1 = por %p4866_p10, %p4865_p6 }
 0x4a7   : > { %p4863_p2 = pneg %p4862_p0 }
 0x4a8   : > { %p4869_p12 = por %p4868_p11, %p4867_p1 }
 0x4aa   : > { %p4870_p13 = pnand %p4869_p12, %p4863_p2 }
 0x4ac   : > { %4873 = shalt.err (!%p4870_p13)
}
 0x4ad   : > { %s4948_s24 = smov 128   ;;  %s4949_s15 = smov 8  }
 0x4ae   : > { %4043 = dma.vmem_to_hbm [thread:$0]  (%p5559_p5), %s5475_s14, 256, %s5480_s23, %s3346_s27, %s4948_s24, %s4948_s24, %s4949_s15  }
 0x4af PF: > { %s3390_s25 = sand.u32 1, %s4916_s30   ;;  %p5561_p8 = scmp.ne.s32.totalorder %s5550_s9, 0 }
 0x4b0   : > { %p5562_p7 = scmp.ge.s32.totalorder %s4928_s12, 2  ;;  %s3391_s16 = scalar_lea.sflag [#allocation5], %s3390_s25 }
 0x4b2   : > { %p4070_p9 = pnand %p5562_p7, %p5561_p8 }
 0x4b4   : > { %4907 = dma.done.wait (!%p4070_p9), %s3391_s16, 128  }
 0x4b5   : > { %4909 = vsyncadd (!%p4070_p9), %s3391_s16, 4294967168  ;;  %s3400_s22 = scalar_lea.sflag [#allocation17], %s3390_s25 }
 0x4b6   : > { %4911 = dma.done.wait (!%p4070_p9), %s3400_s22, 256  }
 0x4b7   : > { %4913 = vsyncadd (!%p4070_p9), %s3400_s22, 4294967040  ;;  %p29_p5 = scmp.ge.s32.totalorder %s5178_s19, 4   ;;  %s5563_s30 = smov %s4920_s10 }
 0x4b8   : > { %s5564_s10 = smov %s4924_s11  ;;  %s5565_s11 = smov %s5189_s21 }
 0x4b9   : > { %s5566_s12 = smov %s5178_s19  ;;  %31 = sbr.rel (!%p29_p5) target bundleno = 13 (0xd), region = 146 }
 0x4c0   :  { %3405 = vsyncpa [#allocation4], 1 }
 0x4c1   :  { %3407 = vsyncpa [#allocation4 + $0x1], 1 }
 0x4c2   :  { %3408 = vsyncpa [#allocation7], 1 }
 0x4c3   :  { %3409 = vsyncpa [#allocation10], 1 }
 0x4c4   :  { %3410 = vsyncpa [#allocation13], 1 }
 0x4c5   :  { %3411 = vsyncpa [#allocation5], 1 }
 0x4c6   :  { %3413 = vsyncpa [#allocation5 + $0x1], 1 }
 0x4c7   :  { %3414 = vsyncpa [#allocation17], 1 }
 0x4c8   :  { %3416 = vsyncpa [#allocation17 + $0x1], 1 }

</bundles_post_ra>
